<compile_context>
chip_gen: v6e
topology: v6e:2x2x1
jax: 0.10.0
libtpu: 0.0.40
codegen_flags: <defaults>
</compile_context>

<pallas_src>
import math
import functools

import jax
import jax.numpy as jnp
from jax.experimental import pallas as pl
from jax.experimental.pallas import tpu as pltpu


def encoder_layer_kernel(x_ref, w_ref, w2_ref, o_ref, *, n_heads):
    B, S, D = x_ref.shape
    H = n_heads
    N = B * S
    dh = D // H
    F = w2_ref.shape[0] - H - 1          # inner_ff_size, recovered from the packed buffer
    scale = 1.0 / math.sqrt(dh)
    eps = 1e-5

    # ---- unpack the two packed parameter buffers (all slices lane/sublane-group aligned) ----
    wqkv = w_ref[0:D, 0:3 * D]           # (D, 3D)   LN1-affine already folded in
    wo = w_ref[0:D, 3 * D:4 * D]         # (D, D)
    wf1 = w_ref[0:D, 4 * D:4 * D + F]    # (D, F)    LN2-affine already folded in
    seg = w_ref[0:D, 4 * D + F:4 * D + F + H]          # (D, H) 0/1 head selector (constant)
    bqkv = w_ref[D:D + 1, 0:3 * D]       # (1, 3D)
    bo = w_ref[D:D + 1, 3 * D:4 * D]     # (1, D)
    bf1 = w_ref[D:D + 1, 4 * D:4 * D + F]               # (1, F)
    wf2 = w2_ref[0:F, :]                 # (F, D)
    seg_t = w2_ref[F:F + H, :]           # (H, D) selector transpose (constant)
    bf2 = w2_ref[F + H:F + H + 1, :]     # (1, D)

    # Flatten batch*seq so every projection is one big-row, 128-lane-dense matmul (N, D).
    x = x_ref[...].astype(jnp.float32).reshape(N, D)

    def layer_norm(t):                   # affine is folded into the following Linear
        mu = jnp.mean(t, axis=-1, keepdims=True)
        c = t - mu
        var = jnp.mean(c * c, axis=-1, keepdims=True)
        return c * jax.lax.rsqrt(var + eps)

    # ---------------- sub-layer 1: x = x + MHA(LN1(x)) ----------------
    xn = layer_norm(x)                                                   # (N, D)
    qkv = jnp.dot(xn, wqkv, preferred_element_type=jnp.float32) + bqkv   # (N, 3D)
    q = qkv[:, :D].reshape(B, S, D)
    k = qkv[:, D:2 * D].reshape(B, S, D)
    v = qkv[:, 2 * D:].reshape(B, S, D)

    # scores[b,i,j,h] = (1/sqrt(dh)) * sum_{d in head h} q[b,i,d] * k[b,j,d]
    # (VPU product + one full 128-contraction selector matmul instead of 16 tiny dh=16 matmuls)
    prod = (q[:, :, None, :] * k[:, None, :, :]).reshape(N * S, D)       # (B*S*S, D)
    s = jnp.dot(prod, seg, preferred_element_type=jnp.float32) * scale   # (B*S*S, H)
    s = s.reshape(B, S, S, H)

    # Numerically-stable softmax over the key axis (axis=2).
    s = s - jnp.max(s, axis=2, keepdims=True)
    p = jnp.exp(s)
    p = p * pl.reciprocal(jnp.sum(p, axis=2, keepdims=True), approx=True)

    # ctx[b,i,d] = sum_j p[b,i,j,head(d)] * v[b,j,d]   (heads merged in place)
    p_exp = jnp.dot(p.reshape(N * S, H), seg_t,
                    preferred_element_type=jnp.float32).reshape(B, S, S, D)
    ctx = jnp.sum(p_exp * v[:, None, :, :], axis=2).reshape(N, D)        # (N, D)

    attn = jnp.dot(ctx, wo, preferred_element_type=jnp.float32) + bo
    x = x + attn                                                         # residual (dropout1 = id)

    # ---------------- sub-layer 2: x = x + FFN(LN2(x)) ----------------
    xn = layer_norm(x)
    h1 = jnp.maximum(jnp.dot(xn, wf1, preferred_element_type=jnp.float32) + bf1, 0.0)
    ff = jnp.dot(h1, wf2, preferred_element_type=jnp.float32) + bf2
    x = x + ff                                                           # residual (dropout2 = id)

    o_ref[...] = x.reshape(B, S, D).astype(o_ref.dtype)


@functools.partial(jax.jit, static_argnames=("n_heads",), donate_argnums=(0,))
def encoder_layer(x, w_big, w2_big, *, n_heads):
    B, S, D = x.shape
    kernel = functools.partial(encoder_layer_kernel, n_heads=n_heads)
    return pl.pallas_call(
        kernel,
        out_shape=jax.ShapeDtypeStruct((B, S, D), x.dtype),
        in_specs=[pl.BlockSpec(memory_space=pltpu.MemorySpace.VMEM)] * 3,
        out_specs=pl.BlockSpec(memory_space=pltpu.MemorySpace.VMEM),
        input_output_aliases={0: 0},     # x and the output share shape/dtype; donate the buffer
    )(x, w_big, w2_big)


def pack_params(p, *, d_model, d_ff, n_heads):
    """Host-side: fold LayerNorm affines into the following Linear and pack everything
    (plus the constant 0/1 head-selector matrices) into two HBM buffers."""
    D, F, H = d_model, d_ff, n_heads
    dh = D // H
    seg = (jnp.arange(D)[:, None] // dh == jnp.arange(H)[None, :]).astype(jnp.float32)  # (D, H)

    g1 = p['g1'].reshape(D, 1)
    be1 = p['be1'].reshape(1, D)
    g2 = p['g2'].reshape(D, 1)
    be2 = p['be2'].reshape(1, D)

    wqkv_f = g1 * p['wqkv']                                   # (D, 3D)
    bqkv_f = be1 @ p['wqkv'] + p['bqkv'].reshape(1, 3 * D)    # (1, 3D)
    wf1_f = g2 * p['wf1']                                     # (D, F)
    bf1_f = be2 @ p['wf1'] + p['bf1'].reshape(1, F)           # (1, F)

    w_rows = jnp.concatenate([wqkv_f, p['wo'], wf1_f, seg], axis=1)            # (D, 4D+F+H)
    b_row = jnp.concatenate([bqkv_f, p['bo'].reshape(1, D), bf1_f,
                             jnp.zeros((1, H), jnp.float32)], axis=1)          # (1, 4D+F+H)
    w_big = jnp.concatenate([w_rows, b_row], axis=0)                           # (D+1, 4D+F+H)

    w2_big = jnp.concatenate([p['wf2'], seg.T, p['bf2'].reshape(1, D)], axis=0)  # (F+H+1, D)
    return w_big, w2_big


def reference_encoder_layer(x, p, n_heads):
    B, S, D = x.shape
    dh = D // n_heads
    eps = 1e-5

    def ln(t, g, b):
        mu = t.mean(-1, keepdims=True)
        var = ((t - mu) ** 2).mean(-1, keepdims=True)
        return (t - mu) / jnp.sqrt(var + eps) * g + b

    # MHA
    x2 = ln(x, p['g1'], p['be1'])
    qkv = x2 @ p['wqkv'] + p['bqkv']
    q, k, v = qkv[..., :D], qkv[..., D:2 * D], qkv[..., 2 * D:]

    def split(t):
        return t.reshape(B, S, n_heads, dh).transpose(0, 2, 1, 3)        # (B, H, S, dh)

    q, k, v = split(q), split(k), split(v)
    s = jnp.einsum('bhqd,bhkd->bhqk', q, k) / math.sqrt(dh)
    pr = jax.nn.softmax(s, axis=-1)
    ctx = jnp.einsum('bhqk,bhkd->bhqd', pr, v)
    ctx = ctx.transpose(0, 2, 1, 3).reshape(B, S, D)
    x = x + (ctx @ p['wo'] + p['bo'])

    # FFN
    x2 = ln(x, p['g2'], p['be2'])
    h = jax.nn.relu(x2 @ p['wf1'] + p['bf1'])
    x = x + (h @ p['wf2'] + p['bf2'])
    return x


if __name__ == "__main__":
    n_heads = 8
    D = 128               # embed_size (from the module spec)
    F = 4 * D             # inner_ff_size
    B, S = 2, 8

    key = jax.random.PRNGKey(0)
    ks = jax.random.split(key, 12)

    x = jax.random.normal(ks[0], (B, S, D), dtype=jnp.float32)

    # nn.Linear parameters (W: (out, in), b: (out,)) with deterministic init.
    wqkv = jax.random.normal(ks[1], (3 * D, D), jnp.float32) * 0.05
    bqkv = jax.random.normal(ks[2], (3 * D,), jnp.float32) * 0.05
    wo = jax.random.normal(ks[3], (D, D), jnp.float32) * 0.05
    bo = jax.random.normal(ks[4], (D,), jnp.float32) * 0.05
    wf1 = jax.random.normal(ks[5], (F, D), jnp.float32) * 0.05
    bf1 = jax.random.normal(ks[6], (F,), jnp.float32) * 0.05
    wf2 = jax.random.normal(ks[7], (D, F), jnp.float32) * 0.05
    bf2 = jax.random.normal(ks[8], (D,), jnp.float32) * 0.05
    g1 = 1.0 + 0.1 * jax.random.normal(ks[9], (D,), jnp.float32)
    be1 = 0.1 * jax.random.normal(ks[10], (D,), jnp.float32)
    g2 = 1.0 + 0.1 * jax.random.normal(ks[11], (D,), jnp.float32)
    be2 = jnp.zeros((D,), jnp.float32)

    # Pre-transposed weights (x @ W^T convention); biases / LN params as (1, F) rows.
    params = dict(
        g1=g1.reshape(1, D), be1=be1.reshape(1, D),
        wqkv=wqkv.T, bqkv=bqkv.reshape(1, 3 * D),
        wo=wo.T, bo=bo.reshape(1, D),
        g2=g2.reshape(1, D), be2=be2.reshape(1, D),
        wf1=wf1.T, bf1=bf1.reshape(1, F),
        wf2=wf2.T, bf2=bf2.reshape(1, D),
    )

    # Reference is computed BEFORE the kernel call because x's buffer is donated to the output.
    ref = reference_encoder_layer(x, params, n_heads)
    ref = jax.block_until_ready(ref)

    w_big, w2_big = pack_params(params, d_model=D, d_ff=F, n_heads=n_heads)
    out = encoder_layer(x, w_big, w2_big, n_heads=n_heads)
    out = jax.block_until_ready(out)

    assert out.shape == (B, S, D)
    max_err = float(jnp.max(jnp.abs(out - ref)))
    assert jnp.allclose(out, ref, atol=2e-3, rtol=2e-3), (
        f"mismatch vs reference (max abs err {max_err})")

    print("KERNEL_OK")
</pallas_src>

<mosaic_0001>
module attributes {stable_mosaic.version = 11 : i64} {
  func.func @encoder_layer_kernel(%arg0: memref<2x8x128xf32, #tpu.memory_space<vmem>>, %arg1: memref<129x1032xf32, #tpu.memory_space<vmem>>, %arg2: memref<521x128xf32, #tpu.memory_space<vmem>>, %arg3: memref<2x8x128xf32, #tpu.memory_space<vmem>>) attributes {dimension_semantics = [], scalar_prefetch = 0 : i64, scratch_operands = 0 : i64, tpu.core_type = #tpu.core_type<tc>} {
    %c0 = arith.constant 0 : index
    %c0_0 = arith.constant 0 : index
    %0 = vector.load %arg1[%c0, %c0_0] : memref<129x1032xf32, #tpu.memory_space<vmem>>, vector<128x384xf32>
    %c0_1 = arith.constant 0 : index
    %c384 = arith.constant 384 : index
    %1 = vector.load %arg1[%c0_1, %c384] : memref<129x1032xf32, #tpu.memory_space<vmem>>, vector<128x128xf32>
    %c0_2 = arith.constant 0 : index
    %c512 = arith.constant 512 : index
    %2 = vector.load %arg1[%c0_2, %c512] : memref<129x1032xf32, #tpu.memory_space<vmem>>, vector<128x512xf32>
    %c0_3 = arith.constant 0 : index
    %c1024 = arith.constant 1024 : index
    %3 = vector.load %arg1[%c0_3, %c1024] : memref<129x1032xf32, #tpu.memory_space<vmem>>, vector<128x8xf32>
    %c128 = arith.constant 128 : index
    %c0_4 = arith.constant 0 : index
    %4 = vector.load %arg1[%c128, %c0_4] : memref<129x1032xf32, #tpu.memory_space<vmem>>, vector<1x384xf32>
    %c128_5 = arith.constant 128 : index
    %c384_6 = arith.constant 384 : index
    %5 = vector.load %arg1[%c128_5, %c384_6] : memref<129x1032xf32, #tpu.memory_space<vmem>>, vector<1x128xf32>
    %c128_7 = arith.constant 128 : index
    %c512_8 = arith.constant 512 : index
    %6 = vector.load %arg1[%c128_7, %c512_8] : memref<129x1032xf32, #tpu.memory_space<vmem>>, vector<1x512xf32>
    %c0_9 = arith.constant 0 : index
    %c0_10 = arith.constant 0 : index
    %7 = vector.load %arg2[%c0_9, %c0_10] : memref<521x128xf32, #tpu.memory_space<vmem>>, vector<512x128xf32>
    %c512_11 = arith.constant 512 : index
    %c0_12 = arith.constant 0 : index
    %8 = vector.load %arg2[%c512_11, %c0_12] : memref<521x128xf32, #tpu.memory_space<vmem>>, vector<8x128xf32>
    %c520 = arith.constant 520 : index
    %c0_13 = arith.constant 0 : index
    %9 = vector.load %arg2[%c520, %c0_13] : memref<521x128xf32, #tpu.memory_space<vmem>>, vector<1x128xf32>
    %c0_14 = arith.constant 0 : index
    %c0_15 = arith.constant 0 : index
    %c0_16 = arith.constant 0 : index
    %10 = vector.load %arg0[%c0_14, %c0_15, %c0_16] : memref<2x8x128xf32, #tpu.memory_space<vmem>>, vector<2x8x128xf32>
    %11 = vector.shape_cast %10 : vector<2x8x128xf32> to vector<16x128xf32>
    %cst = arith.constant dense<0.000000e+00> : vector<16xf32>
    %12 = vector.multi_reduction <add>, %11, %cst [1] : vector<16x128xf32> to vector<16xf32>
    %13 = vector.shape_cast %12 : vector<16xf32> to vector<16x1xf32>
    %cst_17 = arith.constant 1.280000e+02 : f32
    %14 = vector.broadcast %cst_17 : f32 to vector<16x1xf32>
    %15 = arith.divf %13, %14 : vector<16x1xf32>
    %16 = vector.broadcast %15 : vector<16x1xf32> to vector<16x128xf32>
    %17 = arith.subf %11, %16 : vector<16x128xf32>
    %18 = arith.mulf %17, %17 : vector<16x128xf32>
    %cst_18 = arith.constant dense<0.000000e+00> : vector<16xf32>
    %19 = vector.multi_reduction <add>, %18, %cst_18 [1] : vector<16x128xf32> to vector<16xf32>
    %20 = vector.shape_cast %19 : vector<16xf32> to vector<16x1xf32>
    %cst_19 = arith.constant 1.280000e+02 : f32
    %21 = vector.broadcast %cst_19 : f32 to vector<16x1xf32>
    %22 = arith.divf %20, %21 : vector<16x1xf32>
    %cst_20 = arith.constant 9.99999974E-6 : f32
    %23 = vector.broadcast %cst_20 : f32 to vector<16x1xf32>
    %24 = arith.addf %22, %23 : vector<16x1xf32>
    %25 = math.rsqrt %24 : vector<16x1xf32>
    %26 = vector.broadcast %25 : vector<16x1xf32> to vector<16x128xf32>
    %27 = arith.mulf %17, %26 : vector<16x128xf32>
    %cst_21 = arith.constant dense<0.000000e+00> : vector<16x384xf32>
    %28 = tpu.matmul %27, %0, %cst_21 {dimension_numbers = #tpu.dot_dimension_numbers<[1], [0], [0], [1], [0, 0, 1, 1], [], []>} : vector<16x128xf32>, vector<128x384xf32>, vector<16x384xf32> -> vector<16x384xf32>
    %29 = vector.broadcast %4 : vector<1x384xf32> to vector<16x384xf32>
    %30 = arith.addf %28, %29 : vector<16x384xf32>
    %31 = vector.extract_strided_slice %30 {offsets = [0, 0], sizes = [16, 128], strides = [1, 1]} : vector<16x384xf32> to vector<16x128xf32>
    %32 = vector.shape_cast %31 : vector<16x128xf32> to vector<2x8x128xf32>
    %33 = vector.extract_strided_slice %30 {offsets = [0, 128], sizes = [16, 128], strides = [1, 1]} : vector<16x384xf32> to vector<16x128xf32>
    %34 = vector.shape_cast %33 : vector<16x128xf32> to vector<2x8x128xf32>
    %35 = vector.extract_strided_slice %30 {offsets = [0, 256], sizes = [16, 128], strides = [1, 1]} : vector<16x384xf32> to vector<16x128xf32>
    %36 = vector.shape_cast %35 : vector<16x128xf32> to vector<2x8x128xf32>
    %37 = vector.shape_cast %32 : vector<2x8x128xf32> to vector<2x8x1x128xf32>
    %38 = vector.shape_cast %34 : vector<2x8x128xf32> to vector<2x1x8x128xf32>
    %39 = vector.broadcast %37 : vector<2x8x1x128xf32> to vector<2x8x8x128xf32>
    %40 = vector.broadcast %38 : vector<2x1x8x128xf32> to vector<2x8x8x128xf32>
    %41 = arith.mulf %39, %40 : vector<2x8x8x128xf32>
    %42 = vector.shape_cast %41 : vector<2x8x8x128xf32> to vector<128x128xf32>
    %cst_22 = arith.constant dense<0.000000e+00> : vector<128x8xf32>
    %43 = tpu.matmul %42, %3, %cst_22 {dimension_numbers = #tpu.dot_dimension_numbers<[1], [0], [0], [1], [0, 0, 1, 1], [], []>} : vector<128x128xf32>, vector<128x8xf32>, vector<128x8xf32> -> vector<128x8xf32>
    %cst_23 = arith.constant 2.500000e-01 : f32
    %44 = vector.broadcast %cst_23 : f32 to vector<128x8xf32>
    %45 = arith.mulf %43, %44 : vector<128x8xf32>
    %46 = vector.shape_cast %45 : vector<128x8xf32> to vector<2x8x8x8xf32>
    %cst_24 = arith.constant dense<0xFF800000> : vector<2x8x8xf32>
    %47 = vector.multi_reduction <maximumf>, %46, %cst_24 [2] : vector<2x8x8x8xf32> to vector<2x8x8xf32>
    %48 = vector.shape_cast %47 : vector<2x8x8xf32> to vector<2x8x1x8xf32>
    %49 = vector.broadcast %48 : vector<2x8x1x8xf32> to vector<2x8x8x8xf32>
    %50 = arith.subf %46, %49 : vector<2x8x8x8xf32>
    %51 = math.exp %50 : vector<2x8x8x8xf32>
    %cst_25 = arith.constant dense<0.000000e+00> : vector<2x8x8xf32>
    %52 = vector.multi_reduction <add>, %51, %cst_25 [2] : vector<2x8x8x8xf32> to vector<2x8x8xf32>
    %53 = vector.shape_cast %52 : vector<2x8x8xf32> to vector<2x8x1x8xf32>
    %54 = tpu.reciprocal %53 {approx = true} : vector<2x8x1x8xf32> -> vector<2x8x1x8xf32>
    %55 = vector.broadcast %54 : vector<2x8x1x8xf32> to vector<2x8x8x8xf32>
    %56 = arith.mulf %51, %55 : vector<2x8x8x8xf32>
    %57 = vector.shape_cast %56 : vector<2x8x8x8xf32> to vector<128x8xf32>
    %cst_26 = arith.constant dense<0.000000e+00> : vector<128x128xf32>
    %58 = tpu.matmul %57, %8, %cst_26 {dimension_numbers = #tpu.dot_dimension_numbers<[1], [0], [0], [1], [0, 0, 1, 1], [], []>} : vector<128x8xf32>, vector<8x128xf32>, vector<128x128xf32> -> vector<128x128xf32>
    %59 = vector.shape_cast %58 : vector<128x128xf32> to vector<2x8x8x128xf32>
    %60 = vector.shape_cast %36 : vector<2x8x128xf32> to vector<2x1x8x128xf32>
    %61 = vector.broadcast %60 : vector<2x1x8x128xf32> to vector<2x8x8x128xf32>
    %62 = arith.mulf %59, %61 : vector<2x8x8x128xf32>
    %cst_27 = arith.constant dense<0.000000e+00> : vector<2x8x128xf32>
    %63 = vector.multi_reduction <add>, %62, %cst_27 [2] : vector<2x8x8x128xf32> to vector<2x8x128xf32>
    %64 = vector.shape_cast %63 : vector<2x8x128xf32> to vector<16x128xf32>
    %cst_28 = arith.constant dense<0.000000e+00> : vector<16x128xf32>
    %65 = tpu.matmul %64, %1, %cst_28 {dimension_numbers = #tpu.dot_dimension_numbers<[1], [0], [0], [1], [0, 0, 1, 1], [], []>} : vector<16x128xf32>, vector<128x128xf32>, vector<16x128xf32> -> vector<16x128xf32>
    %66 = vector.broadcast %5 : vector<1x128xf32> to vector<16x128xf32>
    %67 = arith.addf %65, %66 : vector<16x128xf32>
    %68 = arith.addf %11, %67 : vector<16x128xf32>
    %cst_29 = arith.constant dense<0.000000e+00> : vector<16xf32>
    %69 = vector.multi_reduction <add>, %68, %cst_29 [1] : vector<16x128xf32> to vector<16xf32>
    %70 = vector.shape_cast %69 : vector<16xf32> to vector<16x1xf32>
    %cst_30 = arith.constant 1.280000e+02 : f32
    %71 = vector.broadcast %cst_30 : f32 to vector<16x1xf32>
    %72 = arith.divf %70, %71 : vector<16x1xf32>
    %73 = vector.broadcast %72 : vector<16x1xf32> to vector<16x128xf32>
    %74 = arith.subf %68, %73 : vector<16x128xf32>
    %75 = arith.mulf %74, %74 : vector<16x128xf32>
    %cst_31 = arith.constant dense<0.000000e+00> : vector<16xf32>
    %76 = vector.multi_reduction <add>, %75, %cst_31 [1] : vector<16x128xf32> to vector<16xf32>
    %77 = vector.shape_cast %76 : vector<16xf32> to vector<16x1xf32>
    %cst_32 = arith.constant 1.280000e+02 : f32
    %78 = vector.broadcast %cst_32 : f32 to vector<16x1xf32>
    %79 = arith.divf %77, %78 : vector<16x1xf32>
    %cst_33 = arith.constant 9.99999974E-6 : f32
    %80 = vector.broadcast %cst_33 : f32 to vector<16x1xf32>
    %81 = arith.addf %79, %80 : vector<16x1xf32>
    %82 = math.rsqrt %81 : vector<16x1xf32>
    %83 = vector.broadcast %82 : vector<16x1xf32> to vector<16x128xf32>
    %84 = arith.mulf %74, %83 : vector<16x128xf32>
    %cst_34 = arith.constant dense<0.000000e+00> : vector<16x512xf32>
    %85 = tpu.matmul %84, %2, %cst_34 {dimension_numbers = #tpu.dot_dimension_numbers<[1], [0], [0], [1], [0, 0, 1, 1], [], []>} : vector<16x128xf32>, vector<128x512xf32>, vector<16x512xf32> -> vector<16x512xf32>
    %86 = vector.broadcast %6 : vector<1x512xf32> to vector<16x512xf32>
    %87 = arith.addf %85, %86 : vector<16x512xf32>
    %cst_35 = arith.constant 0.000000e+00 : f32
    %88 = vector.broadcast %cst_35 : f32 to vector<16x512xf32>
    %89 = arith.maximumf %87, %88 : vector<16x512xf32>
    %cst_36 = arith.constant dense<0.000000e+00> : vector<16x128xf32>
    %90 = tpu.matmul %89, %7, %cst_36 {dimension_numbers = #tpu.dot_dimension_numbers<[1], [0], [0], [1], [0, 0, 1, 1], [], []>} : vector<16x512xf32>, vector<512x128xf32>, vector<16x128xf32> -> vector<16x128xf32>
    %91 = vector.broadcast %9 : vector<1x128xf32> to vector<16x128xf32>
    %92 = arith.addf %90, %91 : vector<16x128xf32>
    %93 = arith.addf %68, %92 : vector<16x128xf32>
    %94 = vector.shape_cast %93 : vector<16x128xf32> to vector<2x8x128xf32>
    %c0_37 = arith.constant 0 : index
    %c0_38 = arith.constant 0 : index
    %c0_39 = arith.constant 0 : index
    %95 = vector.load %arg3[%c0_37, %c0_38, %c0_39] : memref<2x8x128xf32, #tpu.memory_space<vmem>>, vector<2x8x128xf32>
    tpu.vector_store %arg3[%c0_37, %c0_38, %c0_39], %94 {strides = array<i32>} : memref<2x8x128xf32, #tpu.memory_space<vmem>>, vector<2x8x128xf32>,
    return
  }
}

</mosaic_0001>

<bundles_post_ra>
// kernel: encoder_layer.1
= control target key start
LH: loop header
LB: loop body
LE: loop exit
PB: predicated region body
PF: predicated region fallthrough
CT: control target
= control target key end

     0   :  { %8 = vsyncpa [#allocation3], 0  ;;  %s2767_s0 = inlined_call_operand.hbm [shape: f32[2,8,128], index: 0, kind: input, shape index: {}, may-alias: {0,3}]   ;;  %s2768_s1 = inlined_call_operand.hbm [shape: f32[129,1032], index: 1, kind: input, shape index: {}]   ;;  %s2769_s2 = inlined_call_operand.hbm [shape: f32[521,128], index: 2, kind: input, shape index: {}]   ;;  %s2770_s3 = inlined_call_operand.hbm [shape: f32[2,8,128], index: 3, kind: output, shape index: {}, may-alias: {0,3}]  }
   0x1   :  { %9 = vsyncpa [#allocation6], 0 }
   0x2   :  { %10 = vsyncpa [#allocation4], 0  ;;  %s2429_s12 = smov [#allocation5]  }
   0x3   :  { %s28_s13 = sshll.u32 %s2429_s12, 4  ;;  %s29_s13 = int_to_ptr.vmem [resolvable:$true] %s28_s13 }
   0x4   :  { %s2351_s14 = scalar_lea.vmem %s29_s13, 19584  ;;  %p2356_p1 = scmp.lt.s32.totalorder %s29_s13, %s29_s13 }
   0x5   :  { %p2352_p0 = scmp.ne.s32.totalorder %s29_s13, %s2351_s14  ;;  %p2357_p2 = scmp.lt.s32.totalorder %s2351_s14, %s2351_s14 }
   0x7   :  { %p2358_p3 = por %p2357_p2, %p2356_p1 }
   0x9   :  { %p2359_p4 = pnand %p2358_p3, %p2352_p0 }
   0xb   :  { %2362 = shalt.err (!%p2359_p4)
}
   0xc   :  { %s2430_s15 = smov 1152   ;;  %s2431_s16 = smov 72  }
   0xd   :  { %34 = dma.hbm_to_vmem [thread:$0]  %s2768_s1, 19584, %s29_s13, [#allocation6], %s2430_s15, %s2430_s15, %s2431_s16  }
   0xe   :  { %s2432_s19 = smov [#allocation2]  }
   0xf   :  { %s16_s20 = sshll.u32 %s2432_s19, 4  ;;  %s17_s20 = int_to_ptr.vmem [resolvable:$true] %s16_s20 }
  0x10   :  { %s2371_s21 = scalar_lea.vmem %s17_s20, 256  ;;  %p2376_p6 = scmp.lt.s32.totalorder %s17_s20, %s17_s20 }
  0x11   :  { %p2372_p5 = scmp.ne.s32.totalorder %s17_s20, %s2371_s21  ;;  %p2377_p7 = scmp.lt.s32.totalorder %s2371_s21, %s2371_s21 }
  0x13   :  { %p2378_p8 = por %p2377_p7, %p2376_p6 }
  0x15   :  { %p2379_p9 = pnand %p2378_p8, %p2372_p5 }
  0x17   :  { %2382 = shalt.err (!%p2379_p9)
}
  0x18   :  { %s2433_s22 = smov 128   ;;  %s2434_s23 = smov 8  }
  0x19   :  { %22 = dma.hbm_to_vmem [thread:$0]  %s2767_s0, 256, %s17_s20, [#allocation3], %s2433_s22, %s2433_s22, %s2434_s23  }
  0x1a   :  { %s2435_s1 = smov [#allocation7]  }
  0x1b   :  { %s40_s26 = sshll.u32 %s2435_s1, 4  ;;  %s41_s26 = int_to_ptr.vmem [resolvable:$true] %s40_s26 }
  0x1c   :  { %s2391_s27 = scalar_lea.vmem %s41_s26, 8448  ;;  %p2396_p11 = scmp.lt.s32.totalorder %s41_s26, %s41_s26 }
  0x1d   :  { %p2392_p10 = scmp.ne.s32.totalorder %s41_s26, %s2391_s27  ;;  %p2397_p12 = scmp.lt.s32.totalorder %s2391_s27, %s2391_s27 }
  0x1f   :  { %p2398_p13 = por %p2397_p12, %p2396_p11 }
  0x21   :  { %p2399_p0 = pnand %p2398_p13, %p2392_p10 }
  0x23   :  { %2402 = shalt.err (!%p2399_p0)
}
  0x24   :  { %46 = dma.hbm_to_vmem [thread:$0]  %s2769_s2, 8448, %s41_s26, [#allocation6], %s2433_s22, %s2433_s22, %s2434_s23  }
  0x25   :  { %2423 = dma.done.wait [#allocation3], 256  }
  0x26   :  { %2424 = vsyncadd [#allocation3], 4294967040 }
  0x27   :  { %2425 = dma.done.wait [#allocation6], 28032  }
  0x28   :  { %2426 = vsyncadd [#allocation6], 4294939264  ;;  %v271_v0 = vld [vmem:[#allocation2] sm:$0xff]  ;;  %v272_v1 = vld [vmem:[#allocation2 + $0x8] sm:$0xff]  ;;  %v2436_v56 = vmov 0.0   ;;  %vm821_vm0 = vcmask 64512  }
  0x29   :  { %273 = vadd.xlane.f32.xlu0 %v271_v0  ;;  %v102_v2 = vld [vmem:[#allocation5 + $0x440] sm:$0xff]  ;;  %v101_v3 = vld [vmem:[#allocation5 + $0x438] sm:$0xff]  ;;  %v98_v5 = vld [vmem:[#allocation5 + $0x3f0] sm:$0xff]  ;;  %376 = vmatprep.mubr.f32.mxu0 %v2436_v56  ;;  %vm1447_vm1 = vcmask 1041409   ;;  %vm1449_vm2 = vcmask 1042434   ;;  %vm1451_vm3 = vcmask 1043459  }
  0x2a   :  { %v99_v4 = vld [vmem:[#allocation5 + $0x3f8] sm:$0xff]  ;;  %312 = vmatprep.subr.mxu0 %v102_v2  ;;  %v103_v6 = vld [vmem:[#allocation5 + $0x448] sm:$0xff]  ;;  %v96_v7 = vld [vmem:[#allocation5 + $0x3b0] sm:$0xff]  ;;  %vm1453_vm4 = vcmask 1044484   ;;  %vm1455_vm5 = vcmask 1045509   ;;  %vm1457_vm6 = vcmask 1046534  }
  0x2b   :  { %313 = vmatpush1.msra.mxu0 %v101_v3  ;;  %2106 = vmatprep.subr.mxu1 %v103_v6  ;;  %v100_v8 = vld [vmem:[#allocation5 + $0x400] sm:$0xff]  ;;  %v95_v9 = vld [vmem:[#allocation5 + $0x3a8] sm:$0xff]  ;;  %v97_v10 = vld [vmem:[#allocation5 + $0x3b8] sm:$0xff]  ;;  %vm1459_vm7 = vcmask 1047559   ;;  %s2438_s0 = smov [#allocation8]  }
  0x2c   :  { %314 = vmatprep.subr.mxu0 %v99_v4  ;;  %2107 = vmatpush3.msra.mxu1 %v103_v6  ;;  %v93_v11 = vld [vmem:[#allocation5 + $0x368] sm:$0xff]  ;;  %v92_v12 = vld [vmem:[#allocation5 + $0x360] sm:$0xff]  ;;  %v94_v13 = vld [vmem:[#allocation5 + $0x370] sm:$0xff]  ;;  %s1915_s2 = sshll.u32 %s2438_s0, 4  ;;  %s1916_s2 = int_to_ptr.vmem [resolvable:$true] %s1915_s2 }
  0x2d   :  { %275 = vadd.xlane.f32.xlu0 %v272_v1  ;;  %315 = vmatpush1.msra.mxu0 %v98_v5  ;;  %v90_v14 = vld [vmem:[#allocation5 + $0x320] sm:$0xff]  ;;  %v89_v15 = vld [vmem:[#allocation5 + $0x318] sm:$0xff]  ;;  %v86_v25 = vld [vmem:[#allocation5 + $0x2d0] sm:$0xff]  ;;  %s2403_s30 = scalar_lea.vmem %s1916_s2, 256  ;;  %p2408_p2 = scmp.lt.s32.totalorder %s1916_s2, %s1916_s2 }
  0x2e   :  { %2108 = vmatprep.subr.mxu1 %v100_v8  ;;  %316 = vmatprep.subr.mxu0 %v96_v7  ;;  %v87_v16 = vld [vmem:[#allocation5 + $0x2d8] sm:$0xff]  ;;  %v84_v26 = vld [vmem:[#allocation5 + $0x290] sm:$0xff]  ;;  %v91_v27 = vld [vmem:[#allocation5 + $0x328] sm:$0xff]  ;;  %p2404_p1 = scmp.ne.s32.totalorder %s1916_s2, %s2403_s30  ;;  %p2409_p3 = scmp.lt.s32.totalorder %s2403_s30, %s2403_s30 }
  0x2f   :  { %2109 = vmatpush3.msra.mxu1 %v100_v8  ;;  %317 = vmatpush1.msra.mxu0 %v95_v9  ;;  %v83_v28 = vld [vmem:[#allocation5 + $0x288] sm:$0xff]  ;;  %v88_v30 = vld [vmem:[#allocation5 + $0x2e0] sm:$0xff]  ;;  %v85_v33 = vld [vmem:[#allocation5 + $0x298] sm:$0xff] }
  0x30   :  { %2110 = vmatprep.subr.mxu1 %v97_v10  ;;  %318 = vmatprep.subr.mxu0 %v93_v11  ;;  %v81_v29 = vld [vmem:[#allocation5 + $0x248] sm:$0xff]  ;;  %v80_v31 = vld [vmem:[#allocation5 + $0x240] sm:$0xff]  ;;  %v77_v34 = vld [vmem:[#allocation5 + $0x1f8] sm:$0xff]  ;;  %p2410_p4 = por %p2409_p3, %p2408_p2 }
  0x31   :  { %2111 = vmatpush3.msra.mxu1 %v97_v10  ;;  %319 = vmatpush1.msra.mxu0 %v92_v12  ;;  %v78_v32 = vld [vmem:[#allocation5 + $0x200] sm:$0xff]  ;;  %v75_v35 = vld [vmem:[#allocation5 + $0x1b8] sm:$0xff]  ;;  %v82_v36 = vld [vmem:[#allocation5 + $0x250] sm:$0xff] }
  0x32   :  { %2112 = vmatprep.subr.mxu1 %v94_v13  ;;  %320 = vmatprep.subr.mxu0 %v90_v14  ;;  %v74_v37 = vld [vmem:[#allocation5 + $0x1b0] sm:$0xff]  ;;  %v79_v39 = vld [vmem:[#allocation5 + $0x208] sm:$0xff]  ;;  %v76_v42 = vld [vmem:[#allocation5 + $0x1c0] sm:$0xff]  ;;  %p2411_p5 = pnand %p2410_p4, %p2404_p1 }
  0x33   :  { %2113 = vmatpush3.msra.mxu1 %v94_v13  ;;  %321 = vmatpush1.msra.mxu0 %v89_v15  ;;  %v72_v38 = vld [vmem:[#allocation5 + $0x170] sm:$0xff]  ;;  %v71_v40 = vld [vmem:[#allocation5 + $0x168] sm:$0xff]  ;;  %v68_v43 = vld [vmem:[#allocation5 + $0x120] sm:$0xff] }
  0x34   :  { %322 = vmatprep.subr.mxu0 %v87_v16  ;;  %2114 = vmatprep.subr.mxu1 %v91_v27  ;;  %v69_v41 = vld [vmem:[#allocation5 + $0x128] sm:$0xff]  ;;  %v66_v44 = vld [vmem:[#allocation5 + $0xe0] sm:$0xff]  ;;  %v73_v45 = vld [vmem:[#allocation5 + $0x178] sm:$0xff] }
  0x35   :  { %323 = vmatpush1.msra.mxu0 %v86_v25  ;;  %2115 = vmatpush3.msra.mxu1 %v91_v27  ;;  %v65_v46 = vld [vmem:[#allocation5 + $0xd8] sm:$0xff]  ;;  %v70_v48 = vld [vmem:[#allocation5 + $0x130] sm:$0xff]  ;;  %v67_v51 = vld [vmem:[#allocation5 + $0xe8] sm:$0xff] }
  0x36   :  { %324 = vmatprep.subr.mxu0 %v84_v26  ;;  %2116 = vmatprep.subr.mxu1 %v88_v30  ;;  %v63_v47 = vld [vmem:[#allocation5 + $0x98] sm:$0xff]  ;;  %v62_v49 = vld [vmem:[#allocation5 + $0x90] sm:$0xff]  ;;  %v59_v52 = vld [vmem:[#allocation5 + $0x48] sm:$0xff] }
  0x37   :  { %325 = vmatpush1.msra.mxu0 %v83_v28  ;;  %2117 = vmatpush3.msra.mxu1 %v88_v30  ;;  %v60_v50 = vld [vmem:[#allocation5 + $0x50] sm:$0xff]  ;;  %v57_v53 = vld [vmem:[#allocation5 + $0x8] sm:$0xff]  ;;  %v64_v54 = vld [vmem:[#allocation5 + $0xa0] sm:$0xff] }
  0x38   :  { %326 = vmatprep.subr.mxu0 %v81_v29  ;;  %2118 = vmatprep.subr.mxu1 %v85_v33  ;;  %v56_v55 = vld [vmem:[#allocation5] sm:$0xff]  ;;  %v61_v57 = vld [vmem:[#allocation5 + $0x58] sm:$0xff]  ;;  %v58_v58 = vld [vmem:[#allocation5 + $0x10] sm:$0xff] }
  0x39   :  { %327 = vmatpush1.msra.mxu0 %v80_v31  ;;  %2119 = vmatpush3.msra.mxu1 %v85_v33  ;;  %v199_v59 = vld [vmem:[#allocation5 + $0x478] sm:$0xff]  ;;  %v198_v4 = vld [vmem:[#allocation5 + $0x430] sm:$0xff]  ;;  %v197_v7 = vld [vmem:[#allocation5 + $0x3e8] sm:$0xff] }
  0x3a   :  { %328 = vmatprep.subr.mxu0 %v78_v32  ;;  %2120 = vmatprep.subr.mxu1 %v82_v36  ;;  %v196_v8 = vld [vmem:[#allocation5 + $0x3a0] sm:$0xff]  ;;  %v195_v9 = vld [vmem:[#allocation5 + $0x358] sm:$0xff]  ;;  %v194_v10 = vld [vmem:[#allocation5 + $0x310] sm:$0xff] }
  0x3b   :  { %329 = vmatpush1.msra.mxu0 %v77_v34  ;;  %2121 = vmatpush3.msra.mxu1 %v82_v36  ;;  %v193_v11 = vld [vmem:[#allocation5 + $0x2c8] sm:$0xff]  ;;  %v192_v12 = vld [vmem:[#allocation5 + $0x280] sm:$0xff]  ;;  %v191_v13 = vld [vmem:[#allocation5 + $0x238] sm:$0xff] }
  0x3c   :  { %330 = vmatprep.subr.mxu0 %v75_v35  ;;  %2122 = vmatprep.subr.mxu1 %v79_v39  ;;  %v190_v14 = vld [vmem:[#allocation5 + $0x1f0] sm:$0xff]  ;;  %v189_v15 = vld [vmem:[#allocation5 + $0x1a8] sm:$0xff]  ;;  %v188_v16 = vld [vmem:[#allocation5 + $0x160] sm:$0xff] }
  0x3d   :  { %331 = vmatpush1.msra.mxu0 %v74_v37  ;;  %2123 = vmatpush3.msra.mxu1 %v79_v39  ;;  %v201_v26 = vld [vmem:[#allocation5 + $0x480] ss:$8 sm:$0x7] }
  0x3e   :  { %332 = vmatprep.subr.mxu0 %v72_v38  ;;  %2124 = vmatprep.subr.mxu1 %v76_v42 }
  0x3f   :  { %333 = vmatpush1.msra.mxu0 %v71_v40  ;;  %2125 = vmatpush3.msra.mxu1 %v76_v42 }
  0x40   :  { %334 = vmatprep.subr.mxu0 %v69_v41  ;;  %2126 = vmatprep.subr.mxu1 %v73_v45 }
  0x41   :  { %335 = vmatpush1.msra.mxu0 %v68_v43  ;;  %2127 = vmatpush3.msra.mxu1 %v73_v45 }
  0x42   :  { %336 = vmatprep.subr.mxu0 %v66_v44  ;;  %2128 = vmatprep.subr.mxu1 %v70_v48 }
  0x43   :  { %337 = vmatpush1.msra.mxu0 %v65_v46  ;;  %2129 = vmatpush3.msra.mxu1 %v70_v48 }
  0x44   :  { %338 = vmatprep.subr.mxu0 %v63_v47  ;;  %2130 = vmatprep.subr.mxu1 %v67_v51 }
  0x45   :  { %339 = vmatpush1.msra.mxu0 %v62_v49  ;;  %2131 = vmatpush3.msra.mxu1 %v67_v51 }
  0x46   :  { %340 = vmatprep.subr.mxu0 %v60_v50  ;;  %2132 = vmatprep.subr.mxu1 %v64_v54 }
  0x47   :  { %341 = vmatpush1.msra.mxu0 %v59_v52  ;;  %2133 = vmatpush3.msra.mxu1 %v64_v54 }
  0x48   :  { %342 = vmatprep.subr.mxu0 %v57_v53  ;;  %2134 = vmatprep.subr.mxu1 %v61_v57 }
  0x49   :  { %343 = vmatpush1.msra.mxu0 %v56_v55  ;;  %2135 = vmatpush3.msra.mxu1 %v61_v57 }
  0x4a   :  { %2136 = vmatprep.subr.mxu1 %v58_v58  ;;  %2141 = vmatprep.subr.mxu0 %v199_v59 }
  0x4b   :  { %2137 = vmatpush3.msra.mxu1 %v58_v58 }
  0xb2   :  { %v274_v17 = vpop.xlane.xlu0 %273 }
  0xb3   :  { %v278_v18 = vmul.f32 0.0078125, %v274_v17  ;;  %v187_v17 = vld [vmem:[#allocation5 + $0x118] sm:$0xff] }
  0xb5   :  { %v2474_v19 = vsub.f32 %v271_v0, %v278_v18  ;;  %v186_v18 = vld [vmem:[#allocation5 + $0xd0] sm:$0xff] }
  0xb6   :  { %v276_v20 = vpop.xlane.xlu0 %275 }
  0xb7   :  { %v279_v21 = vmul.f32 0.0078125, %v276_v20  ;;  %v282_v22 = vmul.f32 %v2474_v19, %v2474_v19  ;;  %v184_v20 = vld [vmem:[#allocation5 + $0x40] sm:$0xff] }
  0xb9   :  { %v2478_v23 = vsub.f32 %v272_v1, %v279_v21  ;;  %284 = vadd.xlane.f32.xlu1 %v282_v22  ;;  %v297_v21 = vlaneseq }
  0xbb   :  { %v283_v24 = vmul.f32 %v2478_v23, %v2478_v23  ;;  %v2486_v22 = vshrl.u32 %v297_v21, 7 }
  0xbd   :  { %286 = vadd.xlane.f32.xlu1 %v283_v24  ;;  %v2489_v25 = vsub.s32 0, %v2486_v22  ;;  %v303_v31 = vsub.s32 1, %v2486_v22 }
  0xbf   :  { %v300_v28 = vrot.slane %v201_v26, %v2489_v25  ;;  %v304_v36 = vrot.slane %v201_v26, %v303_v31 }
 0x142   :  { %v285_v60 = vpop.xlane.xlu1 %284 }
 0x143   :  { %v288_v61 = vmul.f32 0.0078125, %v285_v60 }
 0x145   :  { %v290_v62 = vadd.f32 1e-05, %v288_v61 }
 0x146   :  { %v287_v63 = vpop.xlane.xlu1 %286 }
 0x147   :  { %2268 = vrsqrt.f32 %v290_v62  ;;  %v289_v0 = vmul.f32 0.0078125, %v287_v63 }
 0x149   :  { %v291_v1 = vadd.f32 1e-05, %v289_v0 }
 0x14b   :  { %2270 = vrsqrt.f32 %v291_v1 }
 0x154   :  { %v2269_v2 = vpop.eup %2268 }
 0x155   :  { %v294_v3 = vmul.f32 %v2269_v2, %v2474_v19  ;;  %v185_v19 = vld [vmem:[#allocation5 + $0x88] sm:$0xff] }
 0x157   :  { %377 = vmatmul.mubr.f32.vlgmr.msra.gmra.mxu0 %v294_v3  ;;  %2138 = vmatprep.mubr.f32.mxu1 %v294_v3 }
 0x158   :  { %v2271_v5 = vpop.eup %2270  ;;  %382 = vmatprep.mubr.f32.mxu0 %v2436_v56  ;;  %2142 = vmatpush3.msra.mxu0 %v199_v59 }
 0x159   :  { %v295_v6 = vmul.f32 %v2271_v5, %v2478_v23  ;;  %2143 = vmatprep.subr.mxu0 %v198_v4  ;;  %v2437_v23 = vmov 1966171168  }
 0x15a   :  { %2144 = vmatpush3.msra.mxu0 %v198_v4  ;;  %v468_v24 = vunpack.c.l.s4 %v2437_v23 }
 0x15b   :  { %383 = vmatmul.mubr.f32.gmra.mxu0 %v295_v6  ;;  %2139 = vmatmul.mubr.f32.vlgmr.msra.gmra.mxu1 %v295_v6 }
 0x15c   :  { %2145 = vmatprep.subr.mxu0 %v197_v7  ;;  %v469_v27 = vunpack.c.0.s8 %v468_v24 }
 0x15d   :  { %2146 = vmatpush3.msra.mxu0 %v197_v7 }
 0x15e   :  { %2147 = vmatprep.subr.mxu0 %v196_v8  ;;  %v2493_v29 = vsub.s32 %v469_v27, %v2486_v22 }
 0x15f   :  { %2148 = vmatpush3.msra.mxu0 %v196_v8 }
 0x160   :  { %2149 = vmatprep.subr.mxu0 %v195_v9 }
 0x161   :  { %2150 = vmatpush3.msra.mxu0 %v195_v9 }
 0x162   :  { %2151 = vmatprep.subr.mxu0 %v194_v10 }
 0x163   :  { %2152 = vmatpush3.msra.mxu0 %v194_v10 }
 0x164   :  { %2153 = vmatprep.subr.mxu0 %v193_v11 }
 0x165   :  { %2154 = vmatpush3.msra.mxu0 %v193_v11 }
 0x166   :  { %2155 = vmatprep.subr.mxu0 %v192_v12 }
 0x167   :  { %2156 = vmatpush3.msra.mxu0 %v192_v12 }
 0x168   :  { %2157 = vmatprep.subr.mxu0 %v191_v13 }
 0x169   :  { %2158 = vmatpush3.msra.mxu0 %v191_v13 }
 0x16a   :  { %2159 = vmatprep.subr.mxu0 %v190_v14 }
 0x16b   :  { %2160 = vmatpush3.msra.mxu0 %v190_v14 }
 0x16c   :  { %2161 = vmatprep.subr.mxu0 %v189_v15 }
 0x16d   :  { %2162 = vmatpush3.msra.mxu0 %v189_v15 }
 0x16e   :  { %2163 = vmatprep.subr.mxu0 %v188_v16 }
 0x16f   :  { %2164 = vmatpush3.msra.mxu0 %v188_v16 }
 0x170   :  { %2165 = vmatprep.subr.mxu0 %v187_v17 }
 0x171   :  { %2166 = vmatpush3.msra.mxu0 %v187_v17 }
 0x172   :  { %2167 = vmatprep.subr.mxu0 %v186_v18 }
 0x173   :  { %2168 = vmatpush3.msra.mxu0 %v186_v18 }
 0x174   :  { %2169 = vmatprep.subr.mxu0 %v185_v19 }
 0x175   :  { %2170 = vmatpush3.msra.mxu0 %v185_v19 }
 0x176   :  { %2171 = vmatprep.subr.mxu0 %v184_v20 }
 0x177   :  { %2172 = vmatpush3.msra.mxu0 %v184_v20 }
 0x217   :  { %v378_v30 = vpop.f32.mrf.mxu0 }
 0x218   :  { %v379_v32 = vadd.f32 %v378_v30, %v300_v28 }
 0x219   :  { %v380_v33 = vpop.f32.mrf.mxu0 }
 0x21a   :  { %v466_v34 = vcombine.high %v379_v32, %v379_v32  ;;  %v473_v35 = vrot.slane %v379_v32, %v2493_v29  ;;  %v381_v45 = vadd.f32 %v380_v33, %v304_v36 }
 0x21b   :  { %v384_v40 = vpop.f32.mrf.mxu0 }
 0x21c   :  { %v480_v37 = vrot.slane %v466_v34, %v2493_v29  ;;  %v481_v38 = vcombine.high %v473_v35, %v473_v35  ;;  %v489_v39 = vrot.slane %v473_v35, %v2493_v29  ;;  %v385_v46 = vadd.f32 %v384_v40, %v300_v28 }
 0x21d   :  { %v386_v6 = vpop.f32.mrf.mxu0 }
 0x21e   :  { %v503_v41 = vrot.slane %v481_v38, %v2493_v29  ;;  %v511_v42 = vcombine.high %v489_v39, %v489_v39  ;;  %v482_v43 = vcombine.high %v480_v37, %v480_v37  ;;  %v496_v44 = vrot.slane %v480_v37, %v2493_v29  ;;  %v269_v38 = vld [vmem:[#allocation7 + $0x200] sm:$0xff] }
 0x21f   :  { %v567_v48 = vrot.slane %v489_v39, %v2489_v25  ;;  %v522_v54 = vrot.slane %v385_v46, %v2493_v29  ;;  %v515_v60 = vcombine.high %v385_v46, %v385_v46  ;;  %v387_v12 = vadd.f32 %v386_v6, %v304_v36  ;;  %2197 = vmatprep.subr.mxu1 %v269_v38 }
 0x220   :  { %v571_v47 = vrot.slane %v503_v41, %v2489_v25  ;;  %v575_v49 = vrot.slane %v511_v42, %v2489_v25  ;;  %v513_v50 = vcombine.high %v503_v41, %v503_v41  ;;  %v583_v57 = vrot.slane %v496_v44, %v2489_v25  ;;  %2198 = vmatpush3.msra.mxu1 %v269_v38 }
 0x221   :  { %v644_v51 = vmul.f32 %v567_v48, %v381_v45  ;;  %v510_v58 = vrot.slane %v482_v43, %v2493_v29  ;;  %v512_v59 = vcombine.high %v496_v44, %v496_v44  ;;  %v530_v61 = vcombine.high %v522_v54, %v522_v54 }
 0x222   :  { %v645_v52 = vmul.f32 %v571_v47, %v381_v45  ;;  %v646_v53 = vmul.f32 %v575_v49, %v381_v45  ;;  %v579_v55 = vrot.slane %v513_v50, %v2489_v25  ;;  %v538_v1 = vrot.slane %v522_v54, %v2493_v29 }
 0x223   :  { %2173 = vmatprep.mubr.f32.mxu0 %v644_v51  ;;  %v587_v63 = vrot.slane %v510_v58, %v2489_v25  ;;  %v514_v0 = vcombine.high %v510_v58, %v510_v58  ;;  %v648_v2 = vmul.f32 %v583_v57, %v381_v45  ;;  %v591_v3 = vrot.slane %v512_v59, %v2489_v25 }
 0x224   :  { %2174 = vmatmul.mubr.f32.vlgmr.msra.gmra.mxu0 %v645_v52  ;;  %v647_v62 = vmul.f32 %v579_v55, %v381_v45  ;;  %v529_v4 = vrot.slane %v515_v60, %v2493_v29  ;;  %v552_v5 = vrot.slane %v530_v61, %v2493_v29  ;;  %v560_v9 = vcombine.high %v538_v1, %v538_v1 }
 0x225   :  { %2176 = vmatprep.mubr.f32.mxu0 %v646_v53  ;;  %v649_v7 = vmul.f32 %v587_v63, %v381_v45  ;;  %v595_v8 = vrot.slane %v514_v0, %v2489_v25  ;;  %v650_v10 = vmul.f32 %v591_v3, %v381_v45  ;;  %v599_v11 = vrot.slane %v538_v1, %v2489_v25 }
 0x226   :  { %v531_v13 = vcombine.high %v529_v4, %v529_v4  ;;  %v603_v15 = vrot.slane %v552_v5, %v2489_v25  ;;  %v562_v16 = vcombine.high %v552_v5, %v552_v5  ;;  %v545_v17 = vrot.slane %v529_v4, %v2493_v29 }
 0x227   :  { %v651_v14 = vmul.f32 %v595_v8, %v381_v45  ;;  %v652_v18 = vmul.f32 %v599_v11, %v387_v12  ;;  %v607_v19 = vrot.slane %v560_v9, %v2489_v25 }
 0x228   :  { %2177 = vmatmul.mubr.f32.gmra.mxu0 %v647_v62  ;;  %v653_v20 = vmul.f32 %v603_v15, %v387_v12  ;;  %v611_v21 = vrot.slane %v562_v16, %v2489_v25  ;;  %v559_v23 = vrot.slane %v531_v13, %v2493_v29  ;;  %v615_v26 = vrot.slane %v545_v17, %v2489_v25 }
 0x229   :  { %2179 = vmatprep.mubr.f32.mxu0 %v648_v2  ;;  %v654_v24 = vmul.f32 %v607_v19, %v387_v12  ;;  %v561_v27 = vcombine.high %v545_v17, %v545_v17 }
 0x22a   :  { %v655_v28 = vmul.f32 %v611_v21, %v387_v12  ;;  %v619_v30 = vrot.slane %v559_v23, %v2489_v25  ;;  %v563_v32 = vcombine.high %v559_v23, %v559_v23  ;;  %v656_v33 = vmul.f32 %v615_v26, %v387_v12 }
 0x22b   :  { %v623_v34 = vrot.slane %v561_v27, %v2489_v25 }
 0x22c   :  { %2180 = vmatmul.mubr.f32.gmra.mxu0 %v649_v7  ;;  %v657_v35 = vmul.f32 %v619_v30, %v387_v12  ;;  %v627_v36 = vrot.slane %v563_v32, %v2489_v25 }
 0x22d   :  { %2182 = vmatprep.mubr.f32.mxu0 %v650_v10  ;;  %v658_v37 = vmul.f32 %v623_v34, %v387_v12 }
 0x22e   :  { %v659_v29 = vmul.f32 %v627_v36, %v387_v12 }
 0x230   :  { %2183 = vmatmul.mubr.f32.gmra.mxu0 %v651_v14 }
 0x231   :  { %2185 = vmatprep.mubr.f32.mxu0 %v652_v18 }
 0x234   :  { %2186 = vmatmul.mubr.f32.gmra.mxu0 %v653_v20 }
 0x235   :  { %2188 = vmatprep.mubr.f32.mxu0 %v654_v24 }
 0x238   :  { %2189 = vmatmul.mubr.f32.gmra.mxu0 %v655_v28 }
 0x239   :  { %2191 = vmatprep.mubr.f32.mxu0 %v656_v33 }
 0x23c   :  { %2192 = vmatmul.mubr.f32.gmra.mxu0 %v657_v35 }
 0x23d   :  { %2194 = vmatprep.mubr.f32.mxu0 %v658_v37 }
 0x240   :  { %2195 = vmatmul.mubr.f32.gmra.mxu0 %v659_v29 }
 0x241   :  { %1654 = vmatprep.mubr.f32.mxu0 %v2436_v56 }
 0x2e4   :  { %v2175_v39 = vpop.f32.mrf.mxu0 }
 0x2e5   :  { %v806_v40 = vmul.f32 0.25, %v2175_v39 }
 0x2e6   :  { %v726_v41 = vpop.f32.mrf.mxu0 }
 0x2e7   :  { %v829_v42 = vsel %vm821_vm0, %v806_v40, -inf  ;;  %v805_v43 = vmul.f32 0.25, %v726_v41 }
 0x2e8   :  { %v830_v44 = vrot.slane %v829_v42, 4  ;;  %v2178_v45 = vpop.f32.mrf.mxu0 }
 0x2e9   :  { %v822_v46 = vsel %vm821_vm0, %v805_v43, -inf  ;;  %v2529_v47 = vmul.f32 0.25, %v2178_v45 }
 0x2ea   :  { %v831_v48 = vmax.f32 %v829_v42, %v830_v44  ;;  %v823_v49 = vrot.slane %v822_v46, 4  ;;  %v736_v50 = vpop.f32.mrf.mxu0 }
 0x2eb   :  { %v843_v51 = vsel %vm821_vm0, %v2529_v47, -inf  ;;  %v2533_v52 = vmul.f32 0.25, %v736_v50 }
 0x2ec   :  { %v832_v53 = vrot.slane %v831_v48, 2  ;;  %v824_v54 = vmax.f32 %v822_v46, %v823_v49  ;;  %v844_v55 = vrot.slane %v843_v51, 4  ;;  %v2181_v57 = vpop.f32.mrf.mxu0 }
 0x2ed   :  { %v836_v58 = vsel %vm821_vm0, %v2533_v52, -inf  ;;  %v2537_v59 = vmul.f32 0.25, %v2181_v57 }
 0x2ee   :  { %v833_v60 = vmax.f32 %v831_v48, %v832_v53  ;;  %v825_v61 = vrot.slane %v824_v54, 2  ;;  %v845_v62 = vmax.f32 %v843_v51, %v844_v55  ;;  %v837_v63 = vrot.slane %v836_v58, 4  ;;  %v746_v0 = vpop.f32.mrf.mxu0 }
 0x2ef   :  { %v857_v1 = vsel %vm821_vm0, %v2537_v59, -inf  ;;  %v2541_v2 = vmul.f32 0.25, %v746_v0 }
 0x2f0   :  { %v834_v3 = vrot.slane %v833_v60, 1  ;;  %v826_v4 = vmax.f32 %v824_v54, %v825_v61  ;;  %v846_v5 = vrot.slane %v845_v62, 2  ;;  %v838_v6 = vmax.f32 %v836_v58, %v837_v63  ;;  %v2184_v7 = vpop.f32.mrf.mxu0 }
 0x2f1   :  { %v858_v8 = vrot.slane %v857_v1, 4  ;;  %v850_v9 = vsel %vm821_vm0, %v2541_v2, -inf  ;;  %v2545_v10 = vmul.f32 0.25, %v2184_v7 }
 0x2f2   :  { %v835_v11 = vmax.f32 %v833_v60, %v834_v3  ;;  %v827_v12 = vrot.slane %v826_v4, 1  ;;  %v847_v13 = vmax.f32 %v845_v62, %v846_v5  ;;  %v839_v14 = vrot.slane %v838_v6, 2  ;;  %v756_v15 = vpop.f32.mrf.mxu0 }
 0x2f3   :  { %v859_v16 = vmax.f32 %v857_v1, %v858_v8  ;;  %v851_v17 = vrot.slane %v850_v9, 4  ;;  %v871_v18 = vsel %vm821_vm0, %v2545_v10, -inf  ;;  %v2549_v19 = vmul.f32 0.25, %v756_v15 }
 0x2f4   :  { %v935_v20 = vsub.f32 %v806_v40, %v835_v11  ;;  %v828_v21 = vmax.f32 %v826_v4, %v827_v12  ;;  %v848_v23 = vrot.slane %v847_v13, 1  ;;  %v840_v24 = vmax.f32 %v838_v6, %v839_v14  ;;  %v2187_v26 = vpop.f32.mrf.mxu0 }
 0x2f5   :  { %v860_v27 = vrot.slane %v859_v16, 2  ;;  %v852_v28 = vmax.f32 %v850_v9, %v851_v17  ;;  %v872_v30 = vrot.slane %v871_v18, 4  ;;  %v864_v32 = vsel %vm821_vm0, %v2549_v19, -inf }
 0x2f6   :  { %v952_v33 = vmul.f32 1.442695, %v935_v20  ;;  %v934_v34 = vsub.f32 %v805_v43, %v828_v21  ;;  %v849_v35 = vmax.f32 %v847_v13, %v848_v23  ;;  %v841_v36 = vrot.slane %v840_v24, 1  ;;  %v766_v37 = vpop.f32.mrf.mxu0 }
 0x2f7   :  { %v861_v29 = vmax.f32 %v859_v16, %v860_v27  ;;  %v853_v38 = vrot.slane %v852_v28, 2  ;;  %v873_v39 = vmax.f32 %v871_v18, %v872_v30  ;;  %v865_v41 = vrot.slane %v864_v32, 4 }
 0x2f8   :  { %2272 = vpow2.f32 %v952_v33  ;;  %v950_v40 = vmul.f32 1.442695, %v934_v34  ;;  %v937_v42 = vsub.f32 %v2529_v47, %v849_v35  ;;  %v842_v44 = vmax.f32 %v840_v24, %v841_v36  ;;  %v2190_v50 = vpop.f32.mrf.mxu0 }
 0x2f9   :  { %v862_v45 = vrot.slane %v861_v29, 1  ;;  %v854_v46 = vmax.f32 %v852_v28, %v853_v38  ;;  %v874_v48 = vrot.slane %v873_v39, 2  ;;  %v866_v49 = vmax.f32 %v864_v32, %v865_v41 }
 0x2fa   :  { %2274 = vpow2.f32 %v950_v40  ;;  %v956_v51 = vmul.f32 1.442695, %v937_v42  ;;  %v936_v43 = vsub.f32 %v2533_v52, %v842_v44  ;;  %v2555_v53 = vmul.f32 0.25, %v2187_v26  ;;  %v776_v3 = vpop.f32.mrf.mxu0 }
 0x2fb   :  { %v863_v54 = vmax.f32 %v861_v29, %v862_v45  ;;  %v855_v55 = vrot.slane %v854_v46, 1  ;;  %v875_v57 = vmax.f32 %v873_v39, %v874_v48  ;;  %v867_v58 = vrot.slane %v866_v49, 2 }
 0x2fc   :  { %2276 = vpow2.f32 %v956_v51  ;;  %v954_v60 = vmul.f32 1.442695, %v936_v43  ;;  %v885_v47 = vsel %vm821_vm0, %v2555_v53, -inf  ;;  %v2559_v61 = vmul.f32 0.25, %v766_v37  ;;  %v2193_v21 = vpop.f32.mrf.mxu0 }
 0x2fd   :  { %v939_v62 = vsub.f32 %v2537_v59, %v863_v54  ;;  %v856_v63 = vmax.f32 %v854_v46, %v855_v55  ;;  %v876_v0 = vrot.slane %v875_v57, 1  ;;  %v868_v1 = vmax.f32 %v866_v49, %v867_v58 }
 0x2fe   :  { %2278 = vpow2.f32 %v954_v60  ;;  %v886_v52 = vrot.slane %v885_v47, 4  ;;  %v878_v4 = vsel %vm821_vm0, %v2559_v61, -inf  ;;  %v2564_v5 = vmul.f32 0.25, %v2190_v50 }
 0x2ff   :  { %v960_v6 = vmul.f32 1.442695, %v939_v62  ;;  %v938_v7 = vsub.f32 %v2541_v2, %v856_v63  ;;  %v877_v8 = vmax.f32 %v875_v57, %v876_v0  ;;  %v869_v9 = vrot.slane %v868_v1, 1 }
 0x300   :  { %v887_v11 = vmax.f32 %v885_v47, %v886_v52  ;;  %v879_v12 = vrot.slane %v878_v4, 4  ;;  %v899_v59 = vsel %vm821_vm0, %v2564_v5, -inf  ;;  %v2569_v13 = vmul.f32 0.25, %v776_v3 }
 0x301   :  { %2280 = vpow2.f32 %v960_v6  ;;  %v958_v14 = vmul.f32 1.442695, %v938_v7  ;;  %v941_v15 = vsub.f32 %v2545_v10, %v877_v8  ;;  %v870_v16 = vmax.f32 %v868_v1, %v869_v9 }
 0x302   :  { %v888_v17 = vrot.slane %v887_v11, 2  ;;  %v880_v18 = vmax.f32 %v878_v4, %v879_v12  ;;  %v900_v20 = vrot.slane %v899_v59, 4  ;;  %v892_v2 = vsel %vm821_vm0, %v2569_v13, -inf }
 0x303   :  { %2282 = vpow2.f32 %v958_v14  ;;  %v964_v23 = vmul.f32 1.442695, %v941_v15  ;;  %v940_v24 = vsub.f32 %v2549_v19, %v870_v16  ;;  %v893_v26 = vrot.slane %v892_v2, 4 }
 0x304   :  { %v889_v27 = vmax.f32 %v887_v11, %v888_v17  ;;  %v881_v28 = vrot.slane %v880_v18, 2  ;;  %v901_v30 = vmax.f32 %v899_v59, %v900_v20  ;;  %v2577_v34 = vmul.f32 0.25, %v2193_v21 }
 0x305   :  { %v2575_v32 = vpop.eup %2272  ;;  %2284 = vpow2.f32 %v964_v23  ;;  %v962_v10 = vmul.f32 1.442695, %v940_v24  ;;  %v894_v33 = vmax.f32 %v892_v2, %v893_v26 }
 0x306   :  { %v989_v35 = vsel %vm821_vm0, %v2575_v32, 0.0  ;;  %v890_v36 = vrot.slane %v889_v27, 1  ;;  %v882_v37 = vmax.f32 %v880_v18, %v881_v28  ;;  %v902_v29 = vrot.slane %v901_v30, 2 }
 0x307   :  { %v2581_v38 = vpop.eup %2274  ;;  %v990_v19 = vrot.slane %v989_v35, 4  ;;  %2286 = vpow2.f32 %v962_v10  ;;  %v895_v39 = vrot.slane %v894_v33, 2  ;;  %v913_v50 = vsel %vm821_vm0, %v2577_v34, -inf }
 0x308   :  { %v982_v41 = vsel %vm821_vm0, %v2581_v38, 0.0  ;;  %v891_v40 = vmax.f32 %v889_v27, %v890_v36  ;;  %v883_v42 = vrot.slane %v882_v37, 1  ;;  %v903_v44 = vmax.f32 %v901_v30, %v902_v29 }
 0x309   :  { %v2585_v45 = vpop.eup %2276  ;;  %v991_v46 = vadd.f32 %v990_v19, %v989_v35  ;;  %v983_v48 = vrot.slane %v982_v41, 4  ;;  %v896_v49 = vmax.f32 %v894_v33, %v895_v39  ;;  %v914_v7 = vrot.slane %v913_v50, 4 }
 0x30a   :  { %v1003_v51 = vsel %vm821_vm0, %v2585_v45, 0.0  ;;  %v943_v43 = vsub.f32 %v2555_v53, %v891_v40  ;;  %v884_v54 = vmax.f32 %v882_v37, %v883_v42  ;;  %v904_v55 = vrot.slane %v903_v44, 1  ;;  %v786_v53 = vpop.f32.mrf.mxu0 }
 0x30b   :  { %v2592_v57 = vpop.eup %2278  ;;  %v992_v58 = vrot.slane %v991_v46, 2  ;;  %v984_v60 = vadd.f32 %v983_v48, %v982_v41  ;;  %v1004_v47 = vrot.slane %v1003_v51, 4  ;;  %v897_v62 = vrot.slane %v896_v49, 1 }
 0x30c   :  { %v996_v63 = vsel %vm821_vm0, %v2592_v57, 0.0  ;;  %v968_v0 = vmul.f32 1.442695, %v943_v43  ;;  %v942_v1 = vsub.f32 %v2559_v61, %v884_v54  ;;  %v905_v3 = vmax.f32 %v903_v44, %v904_v55  ;;  %v2196_v23 = vpop.f32.mrf.mxu0 }
 0x30d   :  { %v993_v52 = vadd.f32 %v992_v58, %v991_v46  ;;  %v1005_v4 = vadd.f32 %v1004_v47, %v1003_v51  ;;  %v997_v6 = vrot.slane %v996_v63, 4  ;;  %v898_v12 = vmax.f32 %v896_v49, %v897_v62 }
 0x30e   :  { %v2597_v8 = vpop.eup %2280  ;;  %2288 = vpow2.f32 %v968_v0  ;;  %v966_v9 = vmul.f32 1.442695, %v942_v1  ;;  %v945_v11 = vsub.f32 %v2564_v5, %v905_v3  ;;  %v985_v14 = vrot.slane %v984_v60, 2  ;;  %v796_v40 = vpop.f32.mrf.mxu0 }
 0x30f   :  { %v994_v59 = vrot.slane %v993_v52, 1  ;;  %v1006_v15 = vrot.slane %v1005_v4, 2  ;;  %v998_v16 = vadd.f32 %v997_v6, %v996_v63  ;;  %v1017_v61 = vsel %vm821_vm0, %v2597_v8, 0.0 }
 0x310   :  { %v2600_v17 = vpop.eup %2282  ;;  %2290 = vpow2.f32 %v966_v9  ;;  %v972_v18 = vmul.f32 1.442695, %v945_v11  ;;  %v944_v20 = vsub.f32 %v2569_v13, %v898_v12  ;;  %v2605_v21 = vmul.f32 0.25, %v786_v53 }
 0x311   :  { %v999_v2 = vrot.slane %v998_v16, 2  ;;  %v1018_v5 = vrot.slane %v1017_v61, 4  ;;  %v1010_v26 = vsel %vm821_vm0, %v2600_v17, 0.0  ;;  %v995_v28 = vadd.f32 %v994_v59, %v993_v52 }
 0x312   :  { %v2607_v24 = vpop.eup %2284  ;;  %2292 = vpow2.f32 %v972_v18  ;;  %v970_v27 = vmul.f32 1.442695, %v944_v20  ;;  %v986_v30 = vadd.f32 %v985_v14, %v984_v60  ;;  %v2611_v10 = vadd.f32 %v1006_v15, %v1005_v4 }
 0x313   :  { %v1011_v33 = vrot.slane %v1010_v26, 4  ;;  %v1019_v13 = vadd.f32 %v1018_v5, %v1017_v61  ;;  %v1031_v36 = vsel %vm821_vm0, %v2607_v24, 0.0  ;;  %v915_v37 = vmax.f32 %v913_v50, %v914_v7 }
 0x314   :  { %v2613_v35 = vpop.eup %2286  ;;  %2294 = vpow2.f32 %v970_v27  ;;  %v2617_v29 = vadd.f32 %v999_v2, %v998_v16  ;;  %v1032_v39 = vrot.slane %v1031_v36, 4  ;;  %v906_v48 = vsel %vm821_vm0, %v2605_v21, -inf }
 0x315   :  { %v1012_v19 = vadd.f32 %v1011_v33, %v1010_v26  ;;  %v1024_v41 = vsel %vm821_vm0, %v2613_v35, 0.0  ;;  %v1020_v42 = vrot.slane %v1019_v13, 2  ;;  %v916_v46 = vrot.slane %v915_v37, 2 }
 0x316   :  { %v1025_v44 = vrot.slane %v1024_v41, 4  ;;  %v1033_v51 = vadd.f32 %v1032_v39, %v1031_v36  ;;  %v907_v43 = vrot.slane %v906_v48, 4  ;;  %v2623_v54 = vmul.f32 0.25, %v2196_v23 }
 0x317   :  { %v1013_v49 = vrot.slane %v1012_v19, 2  ;;  %v987_v50 = vrot.slane %v986_v30, 1  ;;  %v2625_v55 = vadd.f32 %v1020_v42, %v1019_v13  ;;  %v917_v58 = vmax.f32 %v915_v37, %v916_v46 }
 0x318   :  { %v2627_v60 = vmul.f32 0.25, %v796_v40  ;;  %2296 = vrcp.f32 %v995_v28  ;;  %v1026_v47 = vadd.f32 %v1025_v44, %v1024_v41  ;;  %v908_v62 = vmax.f32 %v906_v48, %v907_v43 }
 0x319   :  { %v927_v63 = vsel %vm821_vm0, %v2623_v54, -inf  ;;  %v1008_v0 = vrot.slane %v2611_v10, 1  ;;  %v1034_v1 = vrot.slane %v1033_v51, 2  ;;  %v918_v3 = vrot.slane %v917_v58, 1 }
 0x31a   :  { %v928_v52 = vrot.slane %v927_v63, 4  ;;  %v1001_v6 = vrot.slane %v2617_v29, 1  ;;  %v1014_v7 = vadd.f32 %v1013_v49, %v1012_v19  ;;  %v909_v53 = vrot.slane %v908_v62, 2 }
 0x31b   :  { %v2632_v4 = vpop.eup %2288  ;;  %v920_v9 = vsel %vm821_vm0, %v2627_v60, -inf  ;;  %v1022_v11 = vrot.slane %v2625_v55, 1  ;;  %v919_v59 = vmax.f32 %v917_v58, %v918_v3  ;;  %v1027_v16 = vrot.slane %v1026_v47, 2 }
 0x31c   :  { %v1045_v12 = vsel %vm821_vm0, %v2632_v4, 0.0  ;;  %v929_v14 = vmax.f32 %v927_v63, %v928_v52  ;;  %v910_v18 = vmax.f32 %v908_v62, %v909_v53  ;;  %v921_v20 = vrot.slane %v920_v9, 4 }
 0x31d   :  { %v2640_v15 = vpop.eup %2290  ;;  %v1046_v61 = vrot.slane %v1045_v12, 4  ;;  %v1035_v2 = vadd.f32 %v1034_v1, %v1033_v51  ;;  %v947_v5 = vsub.f32 %v2577_v34, %v919_v59  ;;  %v988_v41 = vadd.f32 %v987_v50, %v986_v30 }
 0x31e   :  { %v1038_v23 = vsel %vm821_vm0, %v2640_v15, 0.0  ;;  %v930_v26 = vrot.slane %v929_v14, 2  ;;  %v911_v13 = vrot.slane %v910_v18, 1  ;;  %v922_v36 = vmax.f32 %v920_v9, %v921_v20 }
 0x31f   :  { %v2645_v27 = vpop.eup %2292  ;;  %v1047_v28 = vadd.f32 %v1046_v61, %v1045_v12  ;;  %v1039_v33 = vrot.slane %v1038_v23, 4  ;;  %v976_v19 = vmul.f32 1.442695, %v947_v5  ;;  %v1028_v42 = vadd.f32 %v1027_v16, %v1026_v47 }
 0x320   :  { %v1059_v37 = vsel %vm821_vm0, %v2645_v27, 0.0  ;;  %v931_v39 = vmax.f32 %v929_v14, %v930_v26  ;;  %v912_v48 = vmax.f32 %v910_v18, %v911_v13  ;;  %v923_v51 = vrot.slane %v922_v36, 2 }
 0x321   :  { %v2649_v40 = vpop.eup %2294  ;;  %v1040_v44 = vadd.f32 %v1039_v33, %v1038_v23  ;;  %v1060_v46 = vrot.slane %v1059_v37, 4  ;;  %2298 = vpow2.f32 %v976_v19  ;;  %v1048_v43 = vrot.slane %v1047_v28, 2 }
 0x322   :  { %v1052_v34 = vsel %vm821_vm0, %v2649_v40, 0.0  ;;  %v932_v49 = vrot.slane %v931_v39, 1  ;;  %v946_v1 = vsub.f32 %v2605_v21, %v912_v48  ;;  %v924_v30 = vmax.f32 %v922_v36, %v923_v51 }
 0x323   :  { %v1041_v58 = vrot.slane %v1040_v44, 2  ;;  %v1061_v62 = vadd.f32 %v1060_v46, %v1059_v37  ;;  %v1053_v63 = vrot.slane %v1052_v34, 4  ;;  %2300 = vrcp.f32 %v988_v41 }
 0x324   :  { %v933_v3 = vmax.f32 %v931_v39, %v932_v49  ;;  %v1015_v50 = vrot.slane %v1014_v7, 1  ;;  %v1036_v47 = vrot.slane %v1035_v2, 1  ;;  %v1029_v12 = vrot.slane %v1028_v42, 1 }
 0x325   :  { %v1042_v52 = vadd.f32 %v1041_v58, %v1040_v44  ;;  %v1054_v53 = vadd.f32 %v1053_v63, %v1052_v34  ;;  %v2297_v9 = vpop.eup %2296  ;;  %v974_v59 = vmul.f32 1.442695, %v946_v1  ;;  %v925_v16 = vrot.slane %v924_v30, 1 }
 0x326   :  { %v949_v14 = vsub.f32 %v2623_v54, %v933_v3  ;;  %v1049_v61 = vadd.f32 %v1048_v43, %v1047_v28  ;;  %v1062_v18 = vrot.slane %v1061_v62, 2  ;;  %v1002_v23 = vadd.f32 %v1001_v6, %v2617_v29 }
 0x327   :  { %v1055_v20 = vrot.slane %v1054_v53, 2  ;;  %2302 = vpow2.f32 %v974_v59  ;;  %v926_v5 = vmax.f32 %v924_v30, %v925_v16  ;;  %v1009_v26 = vadd.f32 %v1008_v0, %v2611_v10 }
 0x328   :  { %v980_v21 = vmul.f32 1.442695, %v949_v14  ;;  %v1043_v33 = vrot.slane %v1042_v52, 1  ;;  %2304 = vrcp.f32 %v1002_v23  ;;  %v1016_v36 = vadd.f32 %v1015_v50, %v1014_v7 }
 0x329   :  { %v1056_v13 = vadd.f32 %v1055_v20, %v1054_v53  ;;  %v948_v54 = vsub.f32 %v2627_v60, %v926_v5  ;;  %v1023_v28 = vadd.f32 %v1022_v11, %v2625_v55  ;;  %v1030_v37 = vadd.f32 %v1029_v12, %v1028_v42 }
 0x32a   :  { %2306 = vpow2.f32 %v980_v21  ;;  %v1037_v6 = vadd.f32 %v1036_v47, %v1035_v2  ;;  %v1050_v39 = vrot.slane %v1049_v61, 1  ;;  %v1063_v41 = vadd.f32 %v1062_v18, %v1061_v62 }
 0x32b   :  { %2308 = vrcp.f32 %v1009_v26  ;;  %v1057_v19 = vrot.slane %v1056_v13, 1  ;;  %v978_v29 = vmul.f32 1.442695, %v948_v54  ;;  %v1044_v44 = vadd.f32 %v1043_v33, %v1042_v52 }
 0x32c   :  { %2310 = vrcp.f32 %v1016_v36  ;;  %v1064_v7 = vrot.slane %v1063_v41, 1  ;;  %v1051_v42 = vadd.f32 %v1050_v39, %v1049_v61  ;;  %v1111_v48 = vmul.f32 %v2297_v9, %v2575_v32 }
 0x32d   :  { %2312 = vrcp.f32 %v1023_v28  ;;  %v1058_v60 = vadd.f32 %v1057_v19, %v1056_v13 }
 0x32e   :  { %2314 = vpow2.f32 %v978_v29  ;;  %v2661_v10 = vpop.eup %2298  ;;  %v1065_v51 = vadd.f32 %v1064_v7, %v1063_v41 }
 0x32f   :  { %2316 = vrcp.f32 %v1030_v37  ;;  %v1073_v0 = vsel %vm821_vm0, %v2661_v10, 0.0 }
 0x330   :  { %2318 = vrcp.f32 %v1037_v6  ;;  %v2301_v55 = vpop.eup %2300  ;;  %v1074_v11 = vrot.slane %v1073_v0, 4 }
 0x331   :  { %2320 = vrcp.f32 %v1044_v44  ;;  %v1110_v2 = vmul.f32 %v2301_v55, %v2581_v38 }
 0x332   :  { %v1075_v46 = vadd.f32 %v1074_v11, %v1073_v0  ;;  %2322 = vrcp.f32 %v1058_v60 }
 0x333   :  { %2199 = vmatprep.mubr.msk.f32.mxu1 %vm821_vm0, %v1110_v2  ;;  %2324 = vrcp.f32 %v1051_v42 }
 0x334   :  { %v2668_v34 = vpop.eup %2302  ;;  %v1076_v49 = vrot.slane %v1075_v46, 2  ;;  %2200 = vmatmul.mubr.msk.f32.vlgmr.msra.gmra.mxu1 %vm821_vm0, %v1111_v48  ;;  %2326 = vrcp.f32 %v1065_v51  ;;  %v118_v48 = vld [vmem:[#allocation5 + $0x408] sm:$0xff] }
 0x335   :  { %v2305_v43 = vpop.eup %2304  ;;  %v1066_v58 = vsel %vm821_vm0, %v2668_v34, 0.0  ;;  %v114_v51 = vld [vmem:[#allocation5 + $0x2e8] sm:$0xff] }
 0x336   :  { %v1077_v38 = vadd.f32 %v1076_v49, %v1075_v46  ;;  %v1067_v63 = vrot.slane %v1066_v58, 4  ;;  %v1112_v32 = vmul.f32 %v2305_v43, %v2592_v57  ;;  %v115_v49 = vld [vmem:[#allocation5 + $0x330] sm:$0xff]  ;;  %v113_v43 = vld [vmem:[#allocation5 + $0x2a0] sm:$0xff] }
 0x337   :  { %v2673_v62 = vpop.eup %2306 }
 0x338   :  { %v2309_v1 = vpop.eup %2308  ;;  %v1087_v3 = vsel %vm821_vm0, %v2673_v62, 0.0  ;;  %v1068_v50 = vadd.f32 %v1067_v63, %v1066_v58  ;;  %2202 = vmatprep.mubr.msk.f32.mxu1 %vm821_vm0, %v1112_v32  ;;  %v1078_v9 = vrot.slane %v1077_v38, 1  ;;  %v112_v58 = vld [vmem:[#allocation5 + $0x258] sm:$0xff]  ;;  %v109_v63 = vld [vmem:[#allocation5 + $0x180] sm:$0xff] }
 0x339   :  { %v2311_v30 = vpop.eup %2310  ;;  %v1088_v47 = vrot.slane %v1087_v3, 4  ;;  %v1113_v52 = vmul.f32 %v2309_v1, %v2585_v45  ;;  %v108_v32 = vld [vmem:[#allocation5 + $0x138] sm:$0xff]  ;;  %v107_v1 = vld [vmem:[#allocation5 + $0xf0] sm:$0xff] }
 0x33a   :  { %v2313_v53 = vpop.eup %2312  ;;  %v1114_v12 = vmul.f32 %v2311_v30, %v2600_v17  ;;  %v1069_v14 = vrot.slane %v1068_v50, 2  ;;  %v1079_v17 = vadd.f32 %v1078_v9, %v1077_v38  ;;  %v110_v38 = vld [vmem:[#allocation5 + $0x1c8] sm:$0xff]  ;;  %v105_v30 = vld [vmem:[#allocation5 + $0x60] sm:$0xff] }
 0x33b   :  { %v2315_v59 = vpop.eup %2314  ;;  %v1089_v16 = vadd.f32 %v1088_v47, %v1087_v3  ;;  %2203 = vmatmul.mubr.msk.f32.gmra.mxu1 %vm821_vm0, %v1113_v52  ;;  %v1115_v18 = vmul.f32 %v2313_v53, %v2597_v8  ;;  %v106_v3 = vld [vmem:[#allocation5 + $0xa8] sm:$0xff]  ;;  %v2140_v47 = vpop.f32.mrf.mxu1  ;;  %v307_v52 = vsub.s32 2, %v2486_v22 }
 0x33c   :  { %v2317_v57 = vpop.eup %2316  ;;  %v1080_v61 = vsel %vm821_vm0, %v2315_v59, 0.0  ;;  %2205 = vmatprep.mubr.msk.f32.mxu1 %vm821_vm0, %v1114_v12  ;;  %v1070_v23 = vadd.f32 %v1069_v14, %v1068_v50  ;;  %2328 = vrcp.f32 %v1079_v17  ;;  %v104_v50 = vld [vmem:[#allocation5 + $0x18] sm:$0xff]  ;;  %v2340_v9 = vld [vmem:[#allocation5 + $0x480] ss:$8 sm:$0x7] }
 0x33d   :  { %v2319_v20 = vpop.eup %2318  ;;  %v1090_v45 = vrot.slane %v1089_v16, 2  ;;  %v1081_v21 = vrot.slane %v1080_v61, 4  ;;  %v1116_v5 = vmul.f32 %v2317_v57, %v2613_v35  ;;  %v455_v53 = vpop.f32.mrf.mxu1  ;;  %v308_v12 = vrot.slane %v2340_v9, %v307_v52 }
 0x33e   :  { %v2321_v26 = vpop.eup %2320  ;;  %v1071_v33 = vrot.slane %v1070_v23, 1  ;;  %v1117_v19 = vmul.f32 %v2319_v20, %v2607_v24 }
 0x33f   :  { %v1091_v13 = vadd.f32 %v1090_v45, %v1089_v16  ;;  %v1082_v36 = vadd.f32 %v1081_v21, %v1080_v61  ;;  %2206 = vmatmul.mubr.msk.f32.gmra.mxu1 %vm821_vm0, %v1115_v18  ;;  %v1118_v54 = vmul.f32 %v2321_v26, %v2640_v15  ;;  %v2323_v28 = vpop.eup %2322 }
 0x340   :  { %2208 = vmatprep.mubr.msk.f32.mxu1 %vm821_vm0, %v1116_v5  ;;  %v1072_v29 = vadd.f32 %v1071_v33, %v1070_v23  ;;  %v2325_v6 = vpop.eup %2324  ;;  %v1120_v39 = vmul.f32 %v2323_v28, %v2649_v40 }
 0x341   :  { %v1092_v37 = vrot.slane %v1091_v13, 1  ;;  %v1083_v8 = vrot.slane %v1082_v36, 2  ;;  %v1119_v15 = vmul.f32 %v2325_v6, %v2632_v4  ;;  %v2327_v0 = vpop.eup %2326 }
 0x342   :  { %2330 = vrcp.f32 %v1072_v29  ;;  %v1121_v24 = vmul.f32 %v2327_v0, %v2645_v27  ;;  %v119_v27 = vld [vmem:[#allocation5 + $0x450] sm:$0xff] }
 0x343   :  { %v1084_v35 = vadd.f32 %v1083_v8, %v1082_v36  ;;  %2209 = vmatmul.mubr.msk.f32.gmra.mxu1 %vm821_vm0, %v1117_v19  ;;  %v1093_v41 = vadd.f32 %v1092_v37, %v1091_v13  ;;  %2223 = vmatprep.subr.mxu1 %v119_v27 }
 0x344   :  { %2211 = vmatprep.mubr.msk.f32.mxu1 %vm821_vm0, %v1118_v54  ;;  %2224 = vmatpush3.msra.mxu1 %v119_v27 }
 0x345   :  { %v1085_v44 = vrot.slane %v1084_v35, 1  ;;  %2332 = vrcp.f32 %v1093_v41  ;;  %2225 = vmatprep.subr.mxu1 %v118_v48 }
 0x346   :  { %2226 = vmatpush3.msra.mxu1 %v118_v48 }
 0x347   :  { %2212 = vmatmul.mubr.msk.f32.gmra.mxu1 %vm821_vm0, %v1119_v15  ;;  %v1086_v60 = vadd.f32 %v1085_v44, %v1084_v35 }
 0x348   :  { %2214 = vmatprep.mubr.msk.f32.mxu1 %vm821_vm0, %v1120_v39 }
 0x349   :  { %2334 = vrcp.f32 %v1086_v60  ;;  %v2329_v55 = vpop.eup %2328 }
 0x34a   :  { %v1123_v11 = vmul.f32 %v2329_v55, %v2661_v10  ;;  %v117_v10 = vld [vmem:[#allocation5 + $0x3c0] sm:$0xff] }
 0x34b   :  { %2215 = vmatmul.mubr.msk.f32.gmra.mxu1 %vm821_vm0, %v1121_v24  ;;  %2227 = vmatprep.subr.mxu1 %v117_v10 }
 0x34c   :  { %2228 = vmatpush3.msra.mxu1 %v117_v10 }
 0x34f   :  { %v2331_v7 = vpop.eup %2330 }
 0x350   :  { %v1122_v40 = vmul.f32 %v2331_v7, %v2668_v34  ;;  %v116_v34 = vld [vmem:[#allocation5 + $0x378] sm:$0xff] }
 0x351   :  { %2229 = vmatprep.subr.mxu1 %v116_v34 }
 0x352   :  { %2217 = vmatprep.mubr.msk.f32.mxu1 %vm821_vm0, %v1122_v40  ;;  %v2333_v4 = vpop.eup %2332  ;;  %2230 = vmatpush3.msra.mxu1 %v116_v34 }
 0x353   :  { %2218 = vmatmul.mubr.msk.f32.gmra.mxu1 %vm821_vm0, %v1123_v11  ;;  %v1125_v46 = vmul.f32 %v2333_v4, %v2673_v62  ;;  %2231 = vmatprep.subr.mxu1 %v115_v49  ;;  %v111_v62 = vld [vmem:[#allocation5 + $0x210] sm:$0xff] }
 0x354   :  { %2232 = vmatpush3.msra.mxu1 %v115_v49 }
 0x355   :  { %2233 = vmatprep.subr.mxu1 %v114_v51 }
 0x356   :  { %v2335_v42 = vpop.eup %2334  ;;  %2234 = vmatpush3.msra.mxu1 %v114_v51 }
 0x357   :  { %v1124_v2 = vmul.f32 %v2335_v42, %v2315_v59  ;;  %2235 = vmatprep.subr.mxu1 %v113_v43  ;;  %v456_v59 = vadd.f32 %v455_v53, %v308_v12  ;;  %v2708_v42 = vadd.f32 %v2140_v47, %v308_v12 }
 0x358   :  { %2236 = vmatpush3.msra.mxu1 %v113_v43 }
 0x359   :  { %2220 = vmatprep.mubr.msk.f32.mxu1 %vm821_vm0, %v1124_v2  ;;  %2237 = vmatprep.subr.mxu1 %v112_v58 }
 0x35a   :  { %2221 = vmatmul.mubr.msk.f32.gmra.mxu1 %vm821_vm0, %v1125_v46 }
 0x35b   :  { %2238 = vmatpush3.msra.mxu1 %v112_v58 }
 0x35c   :  { %2239 = vmatprep.subr.mxu1 %v111_v62 }
 0x35d   :  { %2240 = vmatpush3.msra.mxu1 %v111_v62 }
 0x35e   :  { %2241 = vmatprep.subr.mxu1 %v110_v38 }
 0x35f   :  { %2242 = vmatpush3.msra.mxu1 %v110_v38 }
 0x360   :  { %2243 = vmatprep.subr.mxu1 %v109_v63 }
 0x361   :  { %2244 = vmatpush3.msra.mxu1 %v109_v63 }
 0x362   :  { %2245 = vmatprep.subr.mxu1 %v108_v32 }
 0x363   :  { %2246 = vmatpush3.msra.mxu1 %v108_v32 }
 0x364   :  { %2247 = vmatprep.subr.mxu1 %v107_v1 }
 0x365   :  { %2248 = vmatpush3.msra.mxu1 %v107_v1 }
 0x366   :  { %2249 = vmatprep.subr.mxu1 %v106_v3 }
 0x367   :  { %2250 = vmatpush3.msra.mxu1 %v106_v3 }
 0x368   :  { %2251 = vmatprep.subr.mxu1 %v105_v30 }
 0x369   :  { %2252 = vmatpush3.msra.mxu1 %v105_v30 }
 0x36a   :  { %2253 = vmatprep.subr.mxu1 %v104_v50 }
 0x36b   :  { %2254 = vmatpush3.msra.mxu1 %v104_v50 }
 0x3f4   :  { %v2201_v14 = vpop.f32.mrf.mxu1 }
 0x3f5   :  { %v1320_v16 = vmul.f32 %v2201_v14, %v456_v59 }
 0x3f6   :  { %v1240_v57 = vpop.f32.mrf.mxu1 }
 0x3f7   :  { %v1341_v61 = vrot.slane %v1320_v16, 4  ;;  %v1319_v18 = vmul.f32 %v1240_v57, %v456_v59 }
 0x3f9   :  { %v1342_v20 = vadd.f32 %v1341_v61, %v1320_v16  ;;  %v1335_v23 = vrot.slane %v1319_v18, 4 }
 0x3fb   :  { %v2204_v45 = vpop.f32.mrf.mxu1  ;;  %v1336_v21 = vadd.f32 %v1335_v23, %v1319_v18  ;;  %v1343_v26 = vrot.slane %v1342_v20, 2 }
 0x3fc   :  { %v1322_v5 = vmul.f32 %v2204_v45, %v456_v59 }
 0x3fd   :  { %v1250_v17 = vpop.f32.mrf.mxu1  ;;  %v1337_v33 = vrot.slane %v1336_v21, 2  ;;  %v1344_v19 = vadd.f32 %v1343_v26, %v1342_v20 }
 0x3fe   :  { %v1353_v13 = vrot.slane %v1322_v5, 4  ;;  %v1321_v36 = vmul.f32 %v1250_v17, %v456_v59 }
 0x3ff   :  { %v2207_v54 = vpop.f32.mrf.mxu1  ;;  %v1338_v28 = vadd.f32 %v1337_v33, %v1336_v21  ;;  %v1345_v55 = vrot.slane %v1344_v19, 1 }
 0x400   :  { %v1354_v37 = vadd.f32 %v1353_v13, %v1322_v5  ;;  %v1347_v8 = vrot.slane %v1321_v36, 4  ;;  %v1324_v29 = vmul.f32 %v2207_v54, %v456_v59 }
 0x401   :  { %v1260_v6 = vpop.f32.mrf.mxu1  ;;  %v1339_v0 = vrot.slane %v1338_v28, 1  ;;  %v1346_v62 = vadd.f32 %v1345_v55, %v1344_v19 }
 0x402   :  { %v1355_v35 = vrot.slane %v1354_v37, 2  ;;  %v1348_v39 = vadd.f32 %v1347_v8, %v1321_v36  ;;  %v1365_v41 = vrot.slane %v1324_v29, 4  ;;  %v1323_v44 = vmul.f32 %v1260_v6, %v456_v59 }
 0x403   :  { %v2210_v15 = vpop.f32.mrf.mxu1  ;;  %v1340_v49 = vadd.f32 %v1339_v0, %v1338_v28 }
 0x404   :  { %v1349_v60 = vrot.slane %v1348_v39, 2  ;;  %v1326_v24 = vmul.f32 %v2210_v15, %v456_v59  ;;  %v1356_v7 = vadd.f32 %v1355_v35, %v1354_v37  ;;  %v1366_v40 = vadd.f32 %v1365_v41, %v1324_v29 }
 0x405   :  { %v1359_v11 = vrot.slane %v1323_v44, 4  ;;  %v1270_v4 = vpop.f32.mrf.mxu1  ;;  %v1448_v14 = vsel %vm1447_vm1, %v1346_v62, %v1340_v49 }
 0x406   :  { %v1350_v2 = vadd.f32 %v1349_v60, %v1348_v39  ;;  %v1377_v46 = vrot.slane %v1326_v24, 4  ;;  %v1367_v27 = vrot.slane %v1366_v40, 2  ;;  %v1325_v10 = vmul.f32 %v1270_v4, %v456_v59 }
 0x407   :  { %v1360_v48 = vadd.f32 %v1359_v11, %v1323_v44  ;;  %v2213_v34 = vpop.f32.mrf.mxu1  ;;  %v1357_v38 = vrot.slane %v1356_v7, 1 }
 0x408   :  { %v1351_v51 = vrot.slane %v1350_v2, 1  ;;  %v1378_v43 = vadd.f32 %v1377_v46, %v1326_v24  ;;  %v1328_v58 = vmul.f32 %v2213_v34, %v2708_v42  ;;  %v1371_v32 = vrot.slane %v1325_v10, 4 }
 0x409   :  { %v1361_v63 = vrot.slane %v1360_v48, 2  ;;  %v1280_v1 = vpop.f32.mrf.mxu1  ;;  %v1368_v30 = vadd.f32 %v1367_v27, %v1366_v40  ;;  %v1358_v21 = vadd.f32 %v1357_v38, %v1356_v7 }
 0x40a   :  { %v1352_v3 = vadd.f32 %v1351_v51, %v1350_v2  ;;  %v1379_v50 = vrot.slane %v1378_v43, 2  ;;  %v1327_v47 = vmul.f32 %v1280_v1, %v2708_v42  ;;  %v1372_v9 = vadd.f32 %v1371_v32, %v1325_v10 }
 0x40b   :  { %v1362_v53 = vadd.f32 %v1361_v63, %v1360_v48  ;;  %v1389_v12 = vrot.slane %v1328_v58, 4  ;;  %v2216_v59 = vpop.f32.mrf.mxu1  ;;  %v1369_v5 = vrot.slane %v1368_v30, 1 }
 0x40c   :  { %v1380_v16 = vadd.f32 %v1379_v50, %v1378_v43  ;;  %v1383_v57 = vrot.slane %v1327_v47, 4  ;;  %v1450_v61 = vsel %vm1449_vm2, %v1352_v3, %v1448_v14  ;;  %v1373_v20 = vrot.slane %v1372_v9, 2 }
 0x40d   :  { %v1363_v18 = vrot.slane %v1362_v53, 1  ;;  %v1330_v23 = vmul.f32 %v2216_v59, %v2708_v42  ;;  %v1290_v45 = vpop.f32.mrf.mxu1  ;;  %v1390_v36 = vadd.f32 %v1389_v12, %v1328_v58  ;;  %v1452_v8 = vsel %vm1451_vm3, %v1358_v21, %v1450_v61 }
 0x40e   :  { %v1384_v26 = vadd.f32 %v1383_v57, %v1327_v47  ;;  %v1329_v17 = vmul.f32 %v1290_v45, %v2708_v42  ;;  %v1374_v13 = vadd.f32 %v1373_v20, %v1372_v9  ;;  %v1381_v54 = vrot.slane %v1380_v16, 1 }
 0x40f   :  { %v1364_v33 = vadd.f32 %v1363_v18, %v1362_v53  ;;  %v1401_v28 = vrot.slane %v1330_v23, 4  ;;  %v1370_v6 = vadd.f32 %v1369_v5, %v1368_v30  ;;  %v1391_v44 = vrot.slane %v1390_v36, 2 }
 0x410   :  { %v1395_v37 = vrot.slane %v1329_v17, 4  ;;  %v1375_v19 = vrot.slane %v1374_v13, 1  ;;  %v1385_v35 = vrot.slane %v1384_v26, 2  ;;  %v1382_v24 = vadd.f32 %v1381_v54, %v1380_v16 }
 0x411   :  { %v1454_v29 = vsel %vm1453_vm4, %v1364_v33, %v1452_v8  ;;  %v1402_v15 = vadd.f32 %v1401_v28, %v1330_v23  ;;  %v1392_v10 = vadd.f32 %v1391_v44, %v1390_v36  ;;  %v202_v44 = vld [vmem:[#allocation5 + $0x498] ss:$0 sm:$0xff] }
 0x412   :  { %v1396_v39 = vadd.f32 %v1395_v37, %v1329_v17  ;;  %v1376_v41 = vadd.f32 %v1375_v19, %v1374_v13  ;;  %v1456_v55 = vsel %vm1455_vm5, %v1370_v6, %v1454_v29  ;;  %v1386_v11 = vadd.f32 %v1385_v35, %v1384_v26 }
 0x413   :  { %v2219_v60 = vpop.f32.mrf.mxu1  ;;  %v1403_v34 = vrot.slane %v1402_v15, 2  ;;  %v1393_v32 = vrot.slane %v1392_v10, 1 }
 0x414   :  { %v1397_v0 = vrot.slane %v1396_v39, 2  ;;  %v1332_v7 = vmul.f32 %v2219_v60, %v2708_v42  ;;  %v1458_v40 = vsel %vm1457_vm6, %v1376_v41, %v1456_v55  ;;  %v1387_v43 = vrot.slane %v1386_v11, 1 }
 0x415   :  { %v1300_v4 = vpop.f32.mrf.mxu1  ;;  %v1460_v2 = vsel %vm1459_vm7, %v1382_v24, %v1458_v40  ;;  %v1404_v1 = vadd.f32 %v1403_v34, %v1402_v15  ;;  %v1394_v57 = vadd.f32 %v1393_v32, %v1392_v10  ;;  %v2341_v24 = vld [vmem:[#allocation2 + $0x8] sm:$0xff]  ;;  %v2342_v40 = vld [vmem:[#allocation2] sm:$0xff]  ;;  %v179_v34 = vld [vmem:[#allocation5 + $0x428] sm:$0xff] }
 0x416   :  { %v1398_v46 = vadd.f32 %v1397_v0, %v1396_v39  ;;  %v1413_v27 = vrot.slane %v1332_v7, 4  ;;  %v1331_v48 = vmul.f32 %v1300_v4, %v2708_v42  ;;  %2255 = vmatprep.mubr.f32.mxu1 %v1460_v2  ;;  %v1388_v9 = vadd.f32 %v1387_v43, %v1386_v11  ;;  %v181_v4 = vld [vmem:[#allocation5 + $0x460] sm:$0xff]  ;;  %v180_v2 = vld [vmem:[#allocation5 + $0x458] sm:$0xff]  ;;  %v176_v10 = vld [vmem:[#allocation5 + $0x410] sm:$0xff] }
 0x417   :  { %v1405_v61 = vrot.slane %v1404_v1, 1  ;;  %1590 = vmatprep.subr.mxu0 %v181_v4  ;;  %v172_v43 = vld [vmem:[#allocation5 + $0x3c8] sm:$0xff]  ;;  %v168_v32 = vld [vmem:[#allocation5 + $0x380] sm:$0xff]  ;;  %v135_v4 = vld [vmem:[#allocation5 + $0x110] sm:$0xff] }
 0x418   :  { %v1414_v49 = vadd.f32 %v1413_v27, %v1332_v7  ;;  %v1407_v51 = vrot.slane %v1331_v48, 4  ;;  %v1399_v62 = vrot.slane %v1398_v46, 1  ;;  %v1461_v21 = vsel %vm1447_vm1, %v1394_v57, %v1388_v9  ;;  %v177_v27 = vld [vmem:[#allocation5 + $0x418] sm:$0xff]  ;;  %1591 = vmatpush1.msra.mxu0 %v180_v2 }
 0x419   :  { %v1406_v13 = vadd.f32 %v1405_v61, %v1404_v1  ;;  %1592 = vmatprep.subr.mxu0 %v177_v27  ;;  %v170_v1 = vld [vmem:[#allocation5 + $0x390] sm:$0xff]  ;;  %v132_v2 = vld [vmem:[#allocation5 + $0xf8] sm:$0xff] }
 0x41a   :  { %v2222_v58 = vpop.f32.mrf.mxu1  ;;  %v1408_v38 = vadd.f32 %v1407_v51, %v1331_v48  ;;  %v1415_v3 = vrot.slane %v1414_v49, 2  ;;  %v1400_v12 = vadd.f32 %v1399_v62, %v1398_v46  ;;  %v183_v46 = vld [vmem:[#allocation5 + $0x470] sm:$0xff]  ;;  %v182_v48 = vld [vmem:[#allocation5 + $0x468] sm:$0xff]  ;;  %v178_v51 = vld [vmem:[#allocation5 + $0x420] sm:$0xff]  ;;  %1593 = vmatpush1.msra.mxu0 %v176_v10 }
 0x41b   :  { %v1334_v63 = vmul.f32 %v2222_v58, %v2708_v42  ;;  %1667 = vmatprep.subr.mxu1 %v183_v46  ;;  %v175_v58 = vld [vmem:[#allocation5 + $0x3e0] sm:$0xff]  ;;  %v169_v62 = vld [vmem:[#allocation5 + $0x388] sm:$0xff]  ;;  %v129_v27 = vld [vmem:[#allocation5 + $0xb8] sm:$0xff] }
 0x41c   :  { %v1310_v30 = vpop.f32.mrf.mxu1  ;;  %v1409_v50 = vrot.slane %v1408_v38, 2  ;;  %v1416_v18 = vadd.f32 %v1415_v3, %v1414_v49  ;;  %v1462_v5 = vsel %vm1449_vm2, %v1400_v12, %v1461_v21  ;;  %v173_v49 = vld [vmem:[#allocation5 + $0x3d0] sm:$0xff]  ;;  %v165_v3 = vld [vmem:[#allocation5 + $0x340] sm:$0xff]  ;;  %v134_v46 = vld [vmem:[#allocation5 + $0x108] sm:$0xff] }
 0x41d   :  { %v1425_v47 = vrot.slane %v1334_v63, 4  ;;  %v1333_v53 = vmul.f32 %v1310_v30, %v2708_v42  ;;  %v1463_v28 = vsel %vm1451_vm3, %v1406_v13, %v1462_v5  ;;  %1594 = vmatprep.subr.mxu0 %v173_v49  ;;  %v167_v30 = vld [vmem:[#allocation5 + $0x350] sm:$0xff]  ;;  %v159_v5 = vld [vmem:[#allocation5 + $0x2c0] sm:$0xff]  ;;  %v155_v13 = vld [vmem:[#allocation5 + $0x278] sm:$0xff] }
 0x41e   :  { %v1410_v59 = vadd.f32 %v1409_v50, %v1408_v38  ;;  %v1417_v42 = vrot.slane %v1416_v18, 1  ;;  %v174_v38 = vld [vmem:[#allocation5 + $0x3d8] sm:$0xff]  ;;  %1595 = vmatpush1.msra.mxu0 %v172_v43  ;;  %v157_v21 = vld [vmem:[#allocation5 + $0x2b0] sm:$0xff]  ;;  %v124_v43 = vld [vmem:[#allocation5 + $0x68] sm:$0xff] }
 0x41f   :  { %v1426_v14 = vadd.f32 %v1425_v47, %v1334_v63  ;;  %v1419_v16 = vrot.slane %v1333_v53, 4  ;;  %v171_v63 = vld [vmem:[#allocation5 + $0x398] sm:$0xff]  ;;  %1596 = vmatprep.subr.mxu0 %v169_v62  ;;  %v166_v47 = vld [vmem:[#allocation5 + $0x348] sm:$0xff]  ;;  %v128_v10 = vld [vmem:[#allocation5 + $0xb0] sm:$0xff] }
 0x420   :  { %v1411_v20 = vrot.slane %v1410_v59, 1  ;;  %v1418_v19 = vadd.f32 %v1417_v42, %v1416_v18  ;;  %v164_v50 = vld [vmem:[#allocation5 + $0x338] sm:$0xff]  ;;  %1597 = vmatpush1.msra.mxu0 %v168_v32  ;;  %v152_v42 = vld [vmem:[#allocation5 + $0x260] sm:$0xff]  ;;  %v125_v49 = vld [vmem:[#allocation5 + $0x70] sm:$0xff] }
 0x421   :  { %v1427_v23 = vrot.slane %v1426_v14, 2  ;;  %v1420_v45 = vadd.f32 %v1419_v16, %v1333_v53  ;;  %v161_v53 = vld [vmem:[#allocation5 + $0x2f8] sm:$0xff]  ;;  %1598 = vmatprep.subr.mxu0 %v165_v3  ;;  %v121_v62 = vld [vmem:[#allocation5 + $0x28] sm:$0xff]  ;;  %v122_v32 = vld [vmem:[#allocation5 + $0x30] sm:$0xff] }
 0x422   :  { %v1412_v26 = vadd.f32 %v1411_v20, %v1410_v59  ;;  %1599 = vmatpush1.msra.mxu0 %v164_v50  ;;  %v163_v20 = vld [vmem:[#allocation5 + $0x308] sm:$0xff]  ;;  %v268_v3 = vld [vmem:[#allocation7 + $0x1f8] sm:$0xff] }
 0x423   :  { %v1428_v17 = vadd.f32 %v1427_v23, %v1426_v14  ;;  %v1421_v33 = vrot.slane %v1420_v45, 2  ;;  %1600 = vmatprep.subr.mxu0 %v161_v53  ;;  %v160_v23 = vld [vmem:[#allocation5 + $0x2f0] sm:$0xff] }
 0x424   :  { %v1464_v8 = vsel %vm1453_vm4, %v1412_v26, %v1463_v28  ;;  %1601 = vmatpush1.msra.mxu0 %v160_v23  ;;  %v156_v26 = vld [vmem:[#allocation5 + $0x2a8] sm:$0xff]  ;;  %v151_v28 = vld [vmem:[#allocation5 + $0x230] sm:$0xff]  ;;  %v235_v23 = vld [vmem:[#allocation7 + $0xf0] sm:$0xff] }
 0x425   :  { %v1422_v36 = vadd.f32 %v1421_v33, %v1420_v45  ;;  %v1429_v54 = vrot.slane %v1428_v17, 1  ;;  %v1465_v35 = vsel %vm1455_vm5, %v1418_v19, %v1464_v8  ;;  %v162_v45 = vld [vmem:[#allocation5 + $0x300] sm:$0xff]  ;;  %1602 = vmatprep.subr.mxu0 %v157_v21  ;;  %v153_v33 = vld [vmem:[#allocation5 + $0x268] sm:$0xff]  ;;  %v145_v8 = vld [vmem:[#allocation5 + $0x1d8] sm:$0xff] }
 0x426   :  { %1603 = vmatpush1.msra.mxu0 %v156_v26  ;;  %v150_v19 = vld [vmem:[#allocation5 + $0x228] sm:$0xff]  ;;  %v251_v26 = vld [vmem:[#allocation7 + $0x170] sm:$0xff] }
 0x427   :  { %v1423_v37 = vrot.slane %v1422_v36, 1  ;;  %v1430_v6 = vadd.f32 %v1429_v54, %v1428_v17  ;;  %v158_v17 = vld [vmem:[#allocation5 + $0x2b8] sm:$0xff]  ;;  %1604 = vmatprep.subr.mxu0 %v153_v33  ;;  %v149_v54 = vld [vmem:[#allocation5 + $0x220] sm:$0xff]  ;;  %v218_v33 = vld [vmem:[#allocation7 + $0x68] sm:$0xff] }
 0x428   :  { %1605 = vmatpush1.msra.mxu0 %v152_v42  ;;  %v233_v42 = vld [vmem:[#allocation7 + $0xe0] sm:$0xff] }
 0x429   :  { %v1424_v29 = vadd.f32 %v1423_v37, %v1422_v36  ;;  %v154_v36 = vld [vmem:[#allocation5 + $0x270] sm:$0xff]  ;;  %1606 = vmatprep.subr.mxu0 %v149_v54  ;;  %v148_v37 = vld [vmem:[#allocation5 + $0x218] sm:$0xff]  ;;  %v232_v54 = vld [vmem:[#allocation7 + $0xd8] sm:$0xff] }
 0x42a   :  { %1607 = vmatpush1.msra.mxu0 %v148_v37  ;;  %v216_v37 = vld [vmem:[#allocation7 + $0x58] sm:$0xff] }
 0x42b   :  { %v1466_v39 = vsel %vm1457_vm6, %v1424_v29, %v1465_v35  ;;  %v144_v29 = vld [vmem:[#allocation5 + $0x1d0] sm:$0xff]  ;;  %1608 = vmatprep.subr.mxu0 %v145_v8  ;;  %v248_v8 = vld [vmem:[#allocation7 + $0x158] sm:$0xff] }
 0x42c   :  { %v1467_v41 = vsel %vm1459_vm7, %v1430_v6, %v1466_v39  ;;  %v147_v6 = vld [vmem:[#allocation5 + $0x1e8] sm:$0xff]  ;;  %v141_v35 = vld [vmem:[#allocation5 + $0x190] sm:$0xff]  ;;  %v146_v39 = vld [vmem:[#allocation5 + $0x1e0] sm:$0xff]  ;;  %1609 = vmatpush1.msra.mxu0 %v144_v29 }
 0x42d   :  { %2256 = vmatmul.mubr.f32.vlgmr.msra.gmra.mxu1 %v1467_v41  ;;  %v140_v41 = vld [vmem:[#allocation5 + $0x188] sm:$0xff]  ;;  %1610 = vmatprep.subr.mxu0 %v141_v35  ;;  %v263_v29 = vld [vmem:[#allocation7 + $0x1d0] sm:$0xff] }
 0x42e   :  { %1731 = vmatprep.mubr.f32.mxu1 %v2436_v56  ;;  %1668 = vmatpush1.msra.mxu1 %v182_v48  ;;  %v131_v48 = vld [vmem:[#allocation5 + $0xc8] sm:$0xff]  ;;  %v247_v35 = vld [vmem:[#allocation7 + $0x150] sm:$0xff] }
 0x42f   :  { %1669 = vmatprep.subr.mxu1 %v179_v34  ;;  %1611 = vmatpush1.msra.mxu0 %v140_v41  ;;  %v130_v34 = vld [vmem:[#allocation5 + $0xc0] sm:$0xff]  ;;  %v262_v41 = vld [vmem:[#allocation7 + $0x1c8] sm:$0xff] }
 0x430   :  { %1670 = vmatpush1.msra.mxu1 %v178_v51  ;;  %v127_v51 = vld [vmem:[#allocation5 + $0x80] sm:$0xff] }
 0x431   :  { %1671 = vmatprep.subr.mxu1 %v175_v58  ;;  %v126_v58 = vld [vmem:[#allocation5 + $0x78] sm:$0xff] }
 0x432   :  { %1672 = vmatpush1.msra.mxu1 %v174_v38  ;;  %v123_v38 = vld [vmem:[#allocation5 + $0x38] sm:$0xff] }
 0x433   :  { %1673 = vmatprep.subr.mxu1 %v171_v63  ;;  %v120_v63 = vld [vmem:[#allocation5 + $0x20] sm:$0xff] }
 0x434   :  { %1674 = vmatpush1.msra.mxu1 %v170_v1  ;;  %v236_v1 = vld [vmem:[#allocation7 + $0xf8] sm:$0xff] }
 0x435   :  { %1675 = vmatprep.subr.mxu1 %v167_v30 }
 0x436   :  { %1676 = vmatpush1.msra.mxu1 %v166_v47 }
 0x437   :  { %1677 = vmatprep.subr.mxu1 %v163_v20  ;;  %v252_v20 = vld [vmem:[#allocation7 + $0x178] sm:$0xff] }
 0x438   :  { %1678 = vmatpush1.msra.mxu1 %v162_v45  ;;  %v267_v45 = vld [vmem:[#allocation7 + $0x1f0] sm:$0xff] }
 0x439   :  { %1679 = vmatprep.subr.mxu1 %v159_v5  ;;  %v219_v5 = vld [vmem:[#allocation7 + $0x70] sm:$0xff] }
 0x43a   :  { %1680 = vmatpush1.msra.mxu1 %v158_v17  ;;  %v266_v17 = vld [vmem:[#allocation7 + $0x1e8] sm:$0xff] }
 0x43b   :  { %1681 = vmatprep.subr.mxu1 %v155_v13  ;;  %v250_v13 = vld [vmem:[#allocation7 + $0x168] sm:$0xff] }
 0x43c   :  { %1682 = vmatpush1.msra.mxu1 %v154_v36  ;;  %v265_v36 = vld [vmem:[#allocation7 + $0x1e0] sm:$0xff] }
 0x43d   :  { %1683 = vmatprep.subr.mxu1 %v151_v28  ;;  %v264_v28 = vld [vmem:[#allocation7 + $0x1d8] sm:$0xff] }
 0x43e   :  { %1684 = vmatpush1.msra.mxu1 %v150_v19  ;;  %v231_v19 = vld [vmem:[#allocation7 + $0xd0] sm:$0xff] }
 0x43f   :  { %1685 = vmatprep.subr.mxu1 %v147_v6  ;;  %v215_v6 = vld [vmem:[#allocation7 + $0x50] sm:$0xff] }
 0x440   :  { %1686 = vmatpush1.msra.mxu1 %v146_v39  ;;  %v230_v39 = vld [vmem:[#allocation7 + $0xc8] sm:$0xff] }
 0x4ed   :  { %v2257_v15 = vpop.f32.mrf.mxu1 }
 0x4ee   :  { %v1542_v0 = vadd.f32 %v2257_v15, %v202_v44  ;;  %v137_v15 = vld [vmem:[#allocation5 + $0x148] sm:$0xff] }
 0x4ef   :  { %v1536_v60 = vpop.f32.mrf.mxu1  ;;  %1612 = vmatprep.subr.mxu0 %v137_v15  ;;  %v246_v15 = vld [vmem:[#allocation7 + $0x148] sm:$0xff] }
 0x4f0   :  { %v2733_v55 = vadd.f32 %v2341_v24, %v1542_v0  ;;  %v1537_v7 = vadd.f32 %v1536_v60, %v202_v44  ;;  %v143_v44 = vld [vmem:[#allocation5 + $0x1a0] sm:$0xff]  ;;  %v142_v0 = vld [vmem:[#allocation5 + $0x198] sm:$0xff] }
 0x4f1   :  { %1687 = vmatprep.subr.mxu1 %v143_v44  ;;  %v136_v60 = vld [vmem:[#allocation5 + $0x140] sm:$0xff]  ;;  %v139_v24 = vld [vmem:[#allocation5 + $0x158] sm:$0xff]  ;;  %v214_v44 = vld [vmem:[#allocation7 + $0x48] sm:$0xff] }
 0x4f2   :  { %v2735_v11 = vadd.f32 %v2342_v40, %v1537_v7  ;;  %1549 = vadd.xlane.f32.xlu1 %v2733_v55  ;;  %v138_v7 = vld [vmem:[#allocation5 + $0x150] sm:$0xff]  ;;  %1688 = vmatpush1.msra.mxu1 %v142_v0  ;;  %v133_v40 = vld [vmem:[#allocation5 + $0x100] sm:$0xff]  ;;  %v229_v0 = vld [vmem:[#allocation7 + $0xc0] sm:$0xff] }
 0x4f3   :  { %1689 = vmatprep.subr.mxu1 %v139_v24  ;;  %1613 = vmatpush1.msra.mxu0 %v136_v60  ;;  %v261_v60 = vld [vmem:[#allocation7 + $0x1c0] sm:$0xff] }
 0x4f4   :  { %1547 = vadd.xlane.f32.xlu0 %v2735_v11  ;;  %1690 = vmatpush1.msra.mxu1 %v138_v7  ;;  %v213_v24 = vld [vmem:[#allocation7 + $0x40] sm:$0xff] }
 0x4f5   :  { %1614 = vmatprep.subr.mxu0 %v133_v40  ;;  %1691 = vmatprep.subr.mxu1 %v135_v4  ;;  %v245_v7 = vld [vmem:[#allocation7 + $0x140] sm:$0xff]  ;;  %v228_v40 = vld [vmem:[#allocation7 + $0xb8] sm:$0xff] }
 0x4f6   :  { %1615 = vmatpush1.msra.mxu0 %v132_v2  ;;  %1692 = vmatpush1.msra.mxu1 %v134_v46  ;;  %v260_v4 = vld [vmem:[#allocation7 + $0x1b8] sm:$0xff] }
 0x4f7   :  { %1616 = vmatprep.subr.mxu0 %v129_v27  ;;  %1693 = vmatprep.subr.mxu1 %v131_v48  ;;  %v212_v2 = vld [vmem:[#allocation7 + $0x38] sm:$0xff]  ;;  %v227_v27 = vld [vmem:[#allocation7 + $0xb0] sm:$0xff] }
 0x4f8   :  { %1617 = vmatpush1.msra.mxu0 %v128_v10  ;;  %1694 = vmatpush1.msra.mxu1 %v130_v34  ;;  %v244_v46 = vld [vmem:[#allocation7 + $0x138] sm:$0xff]  ;;  %v259_v48 = vld [vmem:[#allocation7 + $0x1b0] sm:$0xff] }
 0x4f9   :  { %1618 = vmatprep.subr.mxu0 %v125_v49  ;;  %1695 = vmatprep.subr.mxu1 %v127_v51  ;;  %v211_v10 = vld [vmem:[#allocation7 + $0x30] sm:$0xff]  ;;  %v226_v49 = vld [vmem:[#allocation7 + $0xa8] sm:$0xff] }
 0x4fa   :  { %1619 = vmatpush1.msra.mxu0 %v124_v43  ;;  %1696 = vmatpush1.msra.mxu1 %v126_v58  ;;  %v243_v34 = vld [vmem:[#allocation7 + $0x130] sm:$0xff]  ;;  %v258_v51 = vld [vmem:[#allocation7 + $0x1a8] sm:$0xff] }
 0x4fb   :  { %1620 = vmatprep.subr.mxu0 %v121_v62  ;;  %1697 = vmatprep.subr.mxu1 %v123_v38  ;;  %v210_v43 = vld [vmem:[#allocation7 + $0x28] sm:$0xff]  ;;  %v225_v62 = vld [vmem:[#allocation7 + $0xa0] sm:$0xff] }
 0x4fc   :  { %1621 = vmatpush1.msra.mxu0 %v120_v63  ;;  %1698 = vmatpush1.msra.mxu1 %v122_v32  ;;  %v242_v58 = vld [vmem:[#allocation7 + $0x128] sm:$0xff]  ;;  %v257_v38 = vld [vmem:[#allocation7 + $0x1a0] sm:$0xff] }
 0x4fd   :  { %2030 = vmatprep.subr.mxu0 %v236_v1  ;;  %2068 = vmatprep.subr.mxu1 %v268_v3  ;;  %v209_v63 = vld [vmem:[#allocation7 + $0x20] sm:$0xff]  ;;  %v224_v1 = vld [vmem:[#allocation7 + $0x98] sm:$0xff] }
 0x4fe   :  { %v241_v32 = vld [vmem:[#allocation7 + $0x120] sm:$0xff]  ;;  %v256_v3 = vld [vmem:[#allocation7 + $0x198] sm:$0xff] }
 0x57b   :  { %v1550_v9 = vpop.xlane.xlu1 %1549 }
 0x57c   :  { %v1552_v12 = vmul.f32 0.0078125, %v1550_v9 }
 0x57d   :  { %v1548_v59 = vpop.xlane.xlu0 %1547 }
 0x57e   :  { %v2740_v14 = vsub.f32 %v2733_v55, %v1552_v12  ;;  %v1551_v16 = vmul.f32 0.0078125, %v1548_v59 }
 0x580   :  { %v2743_v57 = vsub.f32 %v2735_v11, %v1551_v16  ;;  %v1556_v61 = vmul.f32 %v2740_v14, %v2740_v14 }
 0x582   :  { %1559 = vadd.xlane.f32.xlu1 %v1556_v61  ;;  %v1555_v18 = vmul.f32 %v2743_v57, %v2743_v57 }
 0x584   :  { %1557 = vadd.xlane.f32.xlu0 %v1555_v18  ;;  %v220_v18 = vld [vmem:[#allocation7 + $0x78] sm:$0xff] }
 0x60b   :  { %v1560_v30 = vpop.xlane.xlu1 %1559 }
 0x60c   :  { %v1562_v50 = vmul.f32 0.0078125, %v1560_v30  ;;  %v208_v30 = vld [vmem:[#allocation7 + $0x18] sm:$0xff] }
 0x60d   :  { %v1558_v47 = vpop.xlane.xlu0 %1557 }
 0x60e   :  { %v1561_v53 = vmul.f32 0.0078125, %v1558_v47  ;;  %v1564_v9 = vadd.f32 1e-05, %v1562_v50  ;;  %v240_v50 = vld [vmem:[#allocation7 + $0x118] sm:$0xff]  ;;  %v223_v47 = vld [vmem:[#allocation7 + $0x90] sm:$0xff] }
 0x610   :  { %v1563_v12 = vadd.f32 1e-05, %v1561_v53  ;;  %v255_v53 = vld [vmem:[#allocation7 + $0x190] sm:$0xff] }
 0x612   :  { %2336 = vrsqrt.f32 %v1563_v12  ;;  %v239_v12 = vld [vmem:[#allocation7 + $0x110] sm:$0xff] }
 0x613   :  { %2338 = vrsqrt.f32 %v1564_v9  ;;  %v207_v9 = vld [vmem:[#allocation7 + $0x10] sm:$0xff] }
 0x61f   :  { %v2337_v59 = vpop.eup %2336 }
 0x620   :  { %v1567_v16 = vmul.f32 %v2337_v59, %v2743_v57  ;;  %v2339_v61 = vpop.eup %2338  ;;  %v234_v57 = vld [vmem:[#allocation7 + $0xe8] sm:$0xff] }
 0x621   :  { %v1568_v21 = vmul.f32 %v2339_v61, %v2740_v14  ;;  %v249_v14 = vld [vmem:[#allocation7 + $0x160] sm:$0xff]  ;;  %v222_v59 = vld [vmem:[#allocation7 + $0x88] sm:$0xff] }
 0x622   :  { %1655 = vmatmul.mubr.f32.vlgmr.msra.gmra.mxu0 %v1567_v16  ;;  %1732 = vmatmul.mubr.f32.vlgmr.msra.gmra.mxu1 %v1567_v16  ;;  %v254_v16 = vld [vmem:[#allocation7 + $0x188] sm:$0xff] }
 0x623   :  { %1660 = vmatprep.mubr.f32.mxu0 %v2436_v56  ;;  %1737 = vmatprep.mubr.f32.mxu1 %v2436_v56  ;;  %v217_v56 = vld [vmem:[#allocation7 + $0x60] sm:$0xff]  ;;  %v206_v61 = vld [vmem:[#allocation7 + $0x8] sm:$0xff] }
 0x624   :  { %2031 = vmatpush3.msra.mxu0 %v220_v18  ;;  %2069 = vmatpush3.msra.mxu1 %v252_v20  ;;  %v238_v18 = vld [vmem:[#allocation7 + $0x108] sm:$0xff]  ;;  %v221_v20 = vld [vmem:[#allocation7 + $0x80] sm:$0xff] }
 0x625   :  { %2032 = vmatprep.subr.mxu0 %v235_v23  ;;  %2070 = vmatprep.subr.mxu1 %v267_v45  ;;  %v253_v23 = vld [vmem:[#allocation7 + $0x180] sm:$0xff] }
 0x626   :  { %1661 = vmatmul.mubr.f32.gmra.mxu0 %v1568_v21  ;;  %1738 = vmatmul.mubr.f32.gmra.mxu1 %v1568_v21  ;;  %v205_v45 = vld [vmem:[#allocation7] sm:$0xff] }
 0x627   :  { %2033 = vmatpush3.msra.mxu0 %v219_v5  ;;  %2071 = vmatpush3.msra.mxu1 %v251_v26  ;;  %v237_v21 = vld [vmem:[#allocation7 + $0x100] sm:$0xff]  ;;  %v1584_v26 = vsub.s32 3, %v2486_v22 }
 0x628   :  { %2034 = vmatprep.subr.mxu0 %v234_v57  ;;  %2072 = vmatprep.subr.mxu1 %v266_v17  ;;  %v204_v5 = vld [vmem:[#allocation5 + $0x4a0] ss:$8 sm:$0xf] }
 0x629   :  { %2035 = vmatpush3.msra.mxu0 %v218_v33  ;;  %2073 = vmatpush3.msra.mxu1 %v250_v13  ;;  %v1573_v57 = vrot.slane %v204_v5, %v2489_v25  ;;  %v1581_v17 = vrot.slane %v204_v5, %v307_v52  ;;  %v1577_v33 = vrot.slane %v204_v5, %v303_v31 }
 0x62a   :  { %2036 = vmatprep.subr.mxu0 %v233_v42  ;;  %2074 = vmatprep.subr.mxu1 %v265_v36  ;;  %v1585_v13 = vrot.slane %v204_v5, %v1584_v26 }
 0x62b   :  { %2037 = vmatpush3.msra.mxu0 %v217_v56  ;;  %2075 = vmatpush3.msra.mxu1 %v249_v14 }
 0x62c   :  { %2038 = vmatprep.subr.mxu0 %v232_v54  ;;  %2076 = vmatprep.subr.mxu1 %v264_v28 }
 0x62d   :  { %2039 = vmatpush3.msra.mxu0 %v216_v37  ;;  %2077 = vmatpush3.msra.mxu1 %v248_v8 }
 0x62e   :  { %2040 = vmatprep.subr.mxu0 %v231_v19  ;;  %2078 = vmatprep.subr.mxu1 %v263_v29 }
 0x62f   :  { %2041 = vmatpush3.msra.mxu0 %v215_v6  ;;  %2079 = vmatpush3.msra.mxu1 %v247_v35 }
 0x630   :  { %2042 = vmatprep.subr.mxu0 %v230_v39  ;;  %2080 = vmatprep.subr.mxu1 %v262_v41 }
 0x631   :  { %2043 = vmatpush3.msra.mxu0 %v214_v44  ;;  %2081 = vmatpush3.msra.mxu1 %v246_v15 }
 0x632   :  { %2044 = vmatprep.subr.mxu0 %v229_v0  ;;  %2082 = vmatprep.subr.mxu1 %v261_v60 }
 0x633   :  { %2045 = vmatpush3.msra.mxu0 %v213_v24  ;;  %2083 = vmatpush3.msra.mxu1 %v245_v7 }
 0x634   :  { %2046 = vmatprep.subr.mxu0 %v228_v40  ;;  %2084 = vmatprep.subr.mxu1 %v260_v4 }
 0x635   :  { %2047 = vmatpush3.msra.mxu0 %v212_v2  ;;  %2085 = vmatpush3.msra.mxu1 %v244_v46  ;;  %v1944_v2 = vld [vmem:[#allocation7 + $0x208] ss:$0 sm:$0xff] }
 0x636   :  { %2048 = vmatprep.subr.mxu0 %v227_v27  ;;  %2086 = vmatprep.subr.mxu1 %v259_v48 }
 0x637   :  { %2049 = vmatpush3.msra.mxu0 %v211_v10  ;;  %2087 = vmatpush3.msra.mxu1 %v243_v34 }
 0x638   :  { %2050 = vmatprep.subr.mxu0 %v226_v49  ;;  %2088 = vmatprep.subr.mxu1 %v258_v51 }
 0x639   :  { %2051 = vmatpush3.msra.mxu0 %v210_v43  ;;  %2089 = vmatpush3.msra.mxu1 %v242_v58 }
 0x63a   :  { %2052 = vmatprep.subr.mxu0 %v225_v62  ;;  %2090 = vmatprep.subr.mxu1 %v257_v38 }
 0x63b   :  { %2053 = vmatpush3.msra.mxu0 %v209_v63  ;;  %2091 = vmatpush3.msra.mxu1 %v241_v32 }
 0x63c   :  { %2054 = vmatprep.subr.mxu0 %v224_v1  ;;  %2092 = vmatprep.subr.mxu1 %v256_v3 }
 0x63d   :  { %2055 = vmatpush3.msra.mxu0 %v208_v30  ;;  %2093 = vmatpush3.msra.mxu1 %v240_v50 }
 0x63e   :  { %2056 = vmatprep.subr.mxu0 %v223_v47  ;;  %2094 = vmatprep.subr.mxu1 %v255_v53 }
 0x63f   :  { %2057 = vmatpush3.msra.mxu0 %v207_v9  ;;  %2095 = vmatpush3.msra.mxu1 %v239_v12 }
 0x640   :  { %2058 = vmatprep.subr.mxu0 %v222_v59  ;;  %2096 = vmatprep.subr.mxu1 %v254_v16 }
 0x641   :  { %2059 = vmatpush3.msra.mxu0 %v206_v61  ;;  %2097 = vmatpush3.msra.mxu1 %v238_v18 }
 0x642   :  { %2060 = vmatprep.subr.mxu0 %v221_v20  ;;  %2098 = vmatprep.subr.mxu1 %v253_v23 }
 0x643   :  { %2061 = vmatpush3.msra.mxu0 %v205_v45  ;;  %2099 = vmatpush3.msra.mxu1 %v237_v21 }
 0x6e2   :  { %v1656_v42 = vpop.f32.mrf.mxu0  ;;  %v1733_v36 = vpop.f32.mrf.mxu1 }
 0x6e3   :  { %v1657_v56 = vadd.f32 %v1656_v42, %v1573_v57  ;;  %v1734_v14 = vadd.f32 %v1733_v36, %v1581_v17 }
 0x6e4   :  { %v1658_v54 = vpop.f32.mrf.mxu0  ;;  %v1735_v28 = vpop.f32.mrf.mxu1 }
 0x6e5   :  { %v1659_v37 = vadd.f32 %v1658_v54, %v1577_v33  ;;  %v1736_v8 = vadd.f32 %v1735_v28, %v1585_v13  ;;  %v1744_v25 = vmax.f32 %v1657_v56, 0.0  ;;  %v1746_v39 = vmax.f32 %v1734_v14, 0.0 }
 0x6e6   :  { %v1662_v19 = vpop.f32.mrf.mxu0  ;;  %v1739_v29 = vpop.f32.mrf.mxu1 }
 0x6e7   :  { %v1745_v6 = vmax.f32 %v1659_v37, 0.0  ;;  %v1747_v35 = vmax.f32 %v1736_v8, 0.0  ;;  %v1663_v41 = vadd.f32 %v1662_v19, %v1573_v57  ;;  %v1740_v52 = vadd.f32 %v1739_v29, %v1581_v17 }
 0x6e8   :  { %v1664_v44 = vpop.f32.mrf.mxu0  ;;  %v1741_v22 = vpop.f32.mrf.mxu1 }
 0x6e9   :  { %v1665_v31 = vadd.f32 %v1664_v44, %v1577_v33  ;;  %v1742_v15 = vadd.f32 %v1741_v22, %v1585_v13  ;;  %1820 = vmatprep.mubr.f32.mxu0 %v1745_v6  ;;  %1895 = vmatprep.mubr.f32.mxu1 %v1747_v35  ;;  %v1748_v24 = vmax.f32 %v1663_v41, 0.0  ;;  %v1750_v7 = vmax.f32 %v1740_v52, 0.0 }
 0x6ea   :  { %1821 = vmatmul.mubr.f32.vlgmr.msra.gmra.mxu0 %v1744_v25  ;;  %1896 = vmatmul.mubr.f32.vlgmr.msra.gmra.mxu1 %v1746_v39 }
 0x6eb   :  { %v1749_v0 = vmax.f32 %v1665_v31, 0.0  ;;  %v1751_v60 = vmax.f32 %v1742_v15, 0.0 }
 0x6ed   :  { %1825 = vmatprep.mubr.f32.mxu0 %v1749_v0  ;;  %1900 = vmatprep.mubr.f32.mxu1 %v1751_v60 }
 0x6ee   :  { %1826 = vmatmul.mubr.f32.gmra.mxu0 %v1748_v24  ;;  %1901 = vmatmul.mubr.f32.gmra.mxu1 %v1750_v7 }
 0x7aa   :  { %v2062_v40 = vpop.f32.mrf.mxu0  ;;  %v2100_v4 = vpop.f32.mrf.mxu1 }
 0x7ac   :  { %v2063_v46 = vpop.f32.mrf.mxu0  ;;  %v2101_v27 = vpop.f32.mrf.mxu1 }
 0x7ad   :  { %v2064_v48 = vadd.f32 %v2063_v46, %v2062_v40  ;;  %v2102_v51 = vadd.f32 %v2101_v27, %v2100_v4 }
 0x7ae   :  { %v2065_v10 = vpop.f32.mrf.mxu0  ;;  %v2103_v34 = vpop.f32.mrf.mxu1 }
 0x7af   :  { %v1823_v49 = vadd.f32 %v2064_v48, %v1944_v2 }
 0x7b0   :  { %v2066_v43 = vpop.f32.mrf.mxu0  ;;  %v2104_v58 = vpop.f32.mrf.mxu1 }
 0x7b1   :  { %v1898_v62 = vadd.f32 %v2102_v51, %v1823_v49  ;;  %v2067_v38 = vadd.f32 %v2066_v43, %v2065_v10  ;;  %v2105_v1 = vadd.f32 %v2104_v58, %v2103_v34 }
 0x7b3   :  { %v1906_v63 = vadd.f32 %v1898_v62, %v2735_v11  ;;  %v1828_v32 = vadd.f32 %v2067_v38, %v1944_v2 }
 0x7b5   :  { %1908 = vst [vmem:[#allocation8] sm:$0xff] %v1906_v63  ;;  %v1903_v3 = vadd.f32 %v2105_v1, %v1828_v32 }
 0x7b7   :  { %v1907_v30 = vadd.f32 %v1903_v3, %v2733_v55 }
 0x7b9   :  { %1909 = vst [vmem:[#allocation8 + $0x8] sm:$0xff] %v1907_v30 }
 0x7ba   :  { %2414 = shalt.err (!%p2411_p5)
}
 0x7bb   :  { %1921 = dma.vmem_to_hbm [thread:$0]  %s1916_s2, 256, %s2770_s3, [#allocation4], %s2433_s22, %s2433_s22, %s2434_s23  }
 0x7bc   :  { %2427 = dma.done.wait [#allocation4], 256  }
 0x7bd   :  { %2428 = vsyncadd [#allocation4], 4294967040 }
 0x7be   :  { %1925 = vsyncpa [#allocation3], 1 }
 0x7bf   :  { %1926 = vsyncpa [#allocation6], 1 }
 0x7c0   :  { %1927 = vsyncpa [#allocation4], 1 }

</bundles_post_ra>
